<compile_context>
chip_gen: v7x
topology: tpu7x:2x2x1
jax: 0.10.0
libtpu: 0.0.40
codegen_flags: <defaults>
</compile_context>

<pallas_src>
import math

import jax
import jax.numpy as jnp
import numpy as np
from jax.experimental import pallas as pl
from jax.experimental.pallas import tpu as pltpu

NEG_INF = -1e9  # plain Python float (nothing traced is captured by the kernel)


# ---------------------------------------------------------------- helpers ----
def _mm(a, b):  # (m,k) @ (k,n), f32 accumulate on the MXU, default precision
    return jax.lax.dot_general(a, b, (((1,), (0,)), ((), ())),
                               preferred_element_type=jnp.float32)


def _mm_t(a, b):  # (m,k) @ (n,k)^T without materializing a transpose
    return jax.lax.dot_general(a, b, (((1,), (1,)), ((), ())),
                               preferred_element_type=jnp.float32)


def _row_tile(n, max_tile=512):
    """Largest row-tile that divides n, is a multiple of 8, and <= max_tile.
    Falls back to the full slab (always legal for BlockSpec)."""
    if n <= max_tile:
        return n
    for t in range(max_tile, 7, -1):
        if n % t == 0 and t % 8 == 0:
            return t
    return n


# ----------------------------------------------------------------- kernel ----
def content_attention_kernel(q_ref, k_ref, v_ref, mask_ref,
                             wq_ref, bq_ref, wk_ref, bk_ref,
                             out_ref, kproj_ref):
    # q_ref:    (1, TN, D)  tile of flattened query rows (N = T*T*L total)
    # k_ref:    (1, Lq, D)  v_ref: (1, Lq, D)   mask_ref: (1, 1, Lq)
    # kproj_ref: VMEM scratch (Lq, D) -- projected keys, resident per batch.
    D = q_ref.shape[-1]
    inv_sqrt_d = 1.0 / math.sqrt(D)

    # Project the keys once per batch element; reuse for every query-row tile.
    @pl.when(pl.program_id(1) == 0)
    def _():
        kproj_ref[...] = _mm(k_ref[0], wk_ref[...]) + bk_ref[...]   # (Lq, D)

    # Query projection: one full-slab MXU matmul.
    q = _mm(q_ref[0], wq_ref[...]) + bq_ref[...]                    # (TN, D)

    # Scaled dot-product scores + mask (mul then masked_fill, as in PyTorch).
    s = _mm_t(q, kproj_ref[...]) * inv_sqrt_d                       # (TN, Lq)
    mask = mask_ref[0]                                              # (1, Lq)
    s = jnp.where(mask == 0.0, NEG_INF, s * mask)

    # Numerically-stable softmax over the key axis; reciprocal on the EUP.
    s = s - jnp.max(s, axis=-1, keepdims=True)
    e = jnp.exp(s)
    denom = jnp.sum(e, axis=-1, keepdims=True)
    p = e * pl.reciprocal(denom, approx=True)                       # (TN, Lq)

    # Weighted sum of values; single lane-dense full-tile store.
    out_ref[0] = _mm(p, v_ref[0])                                   # (TN, D)


# ---------------------------------------------------------------- wrapper ----
def content_attention(params, query, key, value, mask):
    """ContentAttention.forward.

    query: (B, T, T, L, D)   key/value: (B, Lq, D)   mask: (B, Lq, 1)
    returns: (B, T, T, L, D)
    """
    B, T1, T2, L, D = query.shape
    Lq = key.shape[1]
    N = T1 * T2 * L
    TN = _row_tile(N)
    NN = N // TN

    # Contiguous views only (no transpose / extra HBM pass).
    q_flat = query.reshape(B, N, D)
    mask_row = mask.reshape(B, 1, Lq).astype(jnp.float32)

    w_q, b_q = params['w_q'], params['b_q']
    w_k, b_k = params['w_k'], params['b_k']

    grid_spec = pltpu.PrefetchScalarGridSpec(
        num_scalar_prefetch=0,
        grid=(B, NN),
        in_specs=[
            pl.BlockSpec((1, TN, D), lambda b, n: (b, n, 0)),   # query rows
            pl.BlockSpec((1, Lq, D), lambda b, n: (b, 0, 0)),   # key (no re-DMA over n)
            pl.BlockSpec((1, Lq, D), lambda b, n: (b, 0, 0)),   # value
            pl.BlockSpec((1, 1, Lq), lambda b, n: (b, 0, 0)),   # mask row
            pl.BlockSpec((D, D),    lambda b, n: (0, 0)),       # w_q (resident)
            pl.BlockSpec((1, D),    lambda b, n: (0, 0)),       # b_q
            pl.BlockSpec((D, D),    lambda b, n: (0, 0)),       # w_k
            pl.BlockSpec((1, D),    lambda b, n: (0, 0)),       # b_k
        ],
        out_specs=pl.BlockSpec((1, TN, D), lambda b, n: (b, n, 0)),
        scratch_shapes=[pltpu.VMEM((Lq, D), jnp.float32)],
    )

    out = pl.pallas_call(
        content_attention_kernel,
        out_shape=jax.ShapeDtypeStruct((B, N, D), jnp.float32),
        grid_spec=grid_spec,
        compiler_params=pltpu.CompilerParams(
            dimension_semantics=("parallel", "arbitrary")),
    )(q_flat, key, value, mask_row, w_q, b_q, w_k, b_k)

    return out.reshape(B, T1, T2, L, D)


# ----------------------------------------------------------- pure-JAX ref ----
def content_attention_ref(params, query, key, value, mask):
    D = query.shape[-1]
    q = jnp.matmul(query, params['w_q']) + params['b_q'][0]
    k = (jnp.matmul(key, params['w_k']) + params['b_k'][0])[:, None, None]
    attn = jnp.matmul(q, jnp.swapaxes(k, 3, 4)) / math.sqrt(D)
    m = jnp.squeeze(mask).astype(jnp.float32)[:, None, None, None, :]
    attn = jnp.where(m == 0, -1e9, attn * m)
    attn = jax.nn.softmax(attn, axis=-1)
    v = value[:, None, None]
    return jnp.matmul(attn, v)


# ------------------------------------------------------------------- main ----
if __name__ == "__main__":
    B, T, L, Lq, D = 2, 8, 4, 8, 128   # N = T*T*L = 256 query rows per batch

    key0 = jax.random.PRNGKey(0)
    kq, kk, kv, kwq, kbq, kwk, kbk = jax.random.split(key0, 7)

    query = jax.random.normal(kq, (B, T, T, L, D), jnp.float32)
    key_in = jax.random.normal(kk, (B, Lq, D), jnp.float32)
    value = jax.random.normal(kv, (B, Lq, D), jnp.float32)

    bound = 1.0 / math.sqrt(D)
    params = {
        'w_q': jax.random.uniform(kwq, (D, D), jnp.float32, -bound, bound),
        'b_q': jax.random.uniform(kbq, (1, D), jnp.float32, -bound, bound),
        'w_k': jax.random.uniform(kwk, (D, D), jnp.float32, -bound, bound),
        'b_k': jax.random.uniform(kbk, (1, D), jnp.float32, -bound, bound),
    }

    # Padding mask over the key axis, shaped (B, Lq, 1) like the module expects.
    q_valid = jnp.array([Lq - 2, Lq - 3])
    mask = (jnp.arange(Lq)[None, :] < q_valid[:, None]
            ).astype(jnp.float32)[..., None]

    out = jax.jit(content_attention)(params, query, key_in, value, mask)
    jax.block_until_ready(out)

    ref = content_attention_ref(params, query, key_in, value, mask)
    np.testing.assert_allclose(np.asarray(out), np.asarray(ref),
                               rtol=2e-2, atol=2e-2)
    print("KERNEL_OK")
</pallas_src>

<mosaic_0001>
module attributes {stable_mosaic.version = 11 : i64} {
  func.func @content_attention_kernel(%arg0: i32, %arg1: i32, %arg2: memref<1x256x128xf32, #tpu.memory_space<vmem>>, %arg3: memref<1x8x128xf32, #tpu.memory_space<vmem>>, %arg4: memref<1x8x128xf32, #tpu.memory_space<vmem>>, %arg5: memref<1x1x8xf32, #tpu.memory_space<vmem>>, %arg6: memref<128x128xf32, #tpu.memory_space<vmem>>, %arg7: memref<1x128xf32, #tpu.memory_space<vmem>>, %arg8: memref<128x128xf32, #tpu.memory_space<vmem>>, %arg9: memref<1x128xf32, #tpu.memory_space<vmem>>, %arg10: memref<1x256x128xf32, #tpu.memory_space<vmem>>, %arg11: memref<8x128xf32, #tpu.memory_space<vmem>>) attributes {dimension_semantics = [#tpu.dimension_semantics<parallel>, #tpu.dimension_semantics<arbitrary>], iteration_bounds = array<i64: 2, 1>, scalar_prefetch = 0 : i64, scratch_operands = 1 : i64, tpu.core_type = #tpu.core_type<tc>, window_params = [{transform_indices = @transform_0, window_bounds = array<i64: 1, 256, 128>}, {transform_indices = @transform_1, window_bounds = array<i64: 1, 8, 128>}, {transform_indices = @transform_2, window_bounds = array<i64: 1, 8, 128>}, {transform_indices = @transform_3, window_bounds = array<i64: 1, 1, 8>}, {pipeline_mode = #tpu.pipeline_mode<synchronous>, transform_indices = @transform_4, window_bounds = array<i64: 128, 128>}, {pipeline_mode = #tpu.pipeline_mode<synchronous>, transform_indices = @transform_5, window_bounds = array<i64: 1, 128>}, {pipeline_mode = #tpu.pipeline_mode<synchronous>, transform_indices = @transform_6, window_bounds = array<i64: 128, 128>}, {pipeline_mode = #tpu.pipeline_mode<synchronous>, transform_indices = @transform_7, window_bounds = array<i64: 1, 128>}, {transform_indices = @transform_8, window_bounds = array<i64: 1, 256, 128>}]} {
    %c0_i32 = arith.constant 0 : i32
    %0 = arith.cmpi eq, %arg1, %c0_i32 : i32
    %1 = arith.extui %0 : i1 to i32
    %c0_i32_0 = arith.constant 0 : i32
    %2 = arith.cmpi ne, %1, %c0_i32_0 : i32
    scf.if %2 {
      %c0_25 = arith.constant 0 : index
      %c0_26 = arith.constant 0 : index
      %c0_27 = arith.constant 0 : index
      %40 = vector.load %arg3[%c0_25, %c0_26, %c0_27] : memref<1x8x128xf32, #tpu.memory_space<vmem>>, vector<1x8x128xf32>
      %41 = vector.shape_cast %40 : vector<1x8x128xf32> to vector<8x128xf32>
      %c0_28 = arith.constant 0 : index
      %c0_29 = arith.constant 0 : index
      %42 = vector.load %arg8[%c0_28, %c0_29] : memref<128x128xf32, #tpu.memory_space<vmem>>, vector<128x128xf32>
      %cst_30 = arith.constant dense<0.000000e+00> : vector<8x128xf32>
      %43 = tpu.matmul %41, %42, %cst_30 {dimension_numbers = #tpu.dot_dimension_numbers<[1], [0], [0], [1], [0, 0, 1, 1], [], []>} : vector<8x128xf32>, vector<128x128xf32>, vector<8x128xf32> -> vector<8x128xf32>
      %c0_31 = arith.constant 0 : index
      %c0_32 = arith.constant 0 : index
      %44 = vector.load %arg9[%c0_31, %c0_32] : memref<1x128xf32, #tpu.memory_space<vmem>>, vector<1x128xf32>
      %45 = vector.broadcast %44 : vector<1x128xf32> to vector<8x128xf32>
      %46 = arith.addf %43, %45 : vector<8x128xf32>
      %c0_33 = arith.constant 0 : index
      %c0_34 = arith.constant 0 : index
      %47 = vector.load %arg11[%c0_33, %c0_34] : memref<8x128xf32, #tpu.memory_space<vmem>>, vector<8x128xf32>
      tpu.vector_store %arg11[%c0_33, %c0_34], %46 {strides = array<i32>} : memref<8x128xf32, #tpu.memory_space<vmem>>, vector<8x128xf32>,
    } else {
    }
    %c0 = arith.constant 0 : index
    %c0_1 = arith.constant 0 : index
    %c0_2 = arith.constant 0 : index
    %3 = vector.load %arg2[%c0, %c0_1, %c0_2] : memref<1x256x128xf32, #tpu.memory_space<vmem>>, vector<1x256x128xf32>
    %4 = vector.shape_cast %3 : vector<1x256x128xf32> to vector<256x128xf32>
    %c0_3 = arith.constant 0 : index
    %c0_4 = arith.constant 0 : index
    %5 = vector.load %arg6[%c0_3, %c0_4] : memref<128x128xf32, #tpu.memory_space<vmem>>, vector<128x128xf32>
    %cst = arith.constant dense<0.000000e+00> : vector<256x128xf32>
    %6 = tpu.matmul %4, %5, %cst {dimension_numbers = #tpu.dot_dimension_numbers<[1], [0], [0], [1], [0, 0, 1, 1], [], []>} : vector<256x128xf32>, vector<128x128xf32>, vector<256x128xf32> -> vector<256x128xf32>
    %c0_5 = arith.constant 0 : index
    %c0_6 = arith.constant 0 : index
    %7 = vector.load %arg7[%c0_5, %c0_6] : memref<1x128xf32, #tpu.memory_space<vmem>>, vector<1x128xf32>
    %8 = vector.broadcast %7 : vector<1x128xf32> to vector<256x128xf32>
    %9 = arith.addf %6, %8 : vector<256x128xf32>
    %c0_7 = arith.constant 0 : index
    %c0_8 = arith.constant 0 : index
    %10 = vector.load %arg11[%c0_7, %c0_8] : memref<8x128xf32, #tpu.memory_space<vmem>>, vector<8x128xf32>
    %cst_9 = arith.constant dense<0.000000e+00> : vector<256x8xf32>
    %11 = tpu.matmul %9, %10, %cst_9 {dimension_numbers = #tpu.dot_dimension_numbers<[1], [1], [0], [0], [0, 0, 1, 0], [], []>} : vector<256x128xf32>, vector<8x128xf32>, vector<256x8xf32> -> vector<256x8xf32>
    %cst_10 = arith.constant 0.0883883461 : f32
    %12 = vector.broadcast %cst_10 : f32 to vector<256x8xf32>
    %13 = arith.mulf %11, %12 : vector<256x8xf32>
    %c0_11 = arith.constant 0 : index
    %c0_12 = arith.constant 0 : index
    %c0_13 = arith.constant 0 : index
    %14 = vector.load %arg5[%c0_11, %c0_12, %c0_13] : memref<1x1x8xf32, #tpu.memory_space<vmem>>, vector<1x1x8xf32>
    %15 = vector.shape_cast %14 : vector<1x1x8xf32> to vector<1x8xf32>
    %cst_14 = arith.constant 0.000000e+00 : f32
    %16 = vector.broadcast %cst_14 : f32 to vector<1x8xf32>
    %17 = arith.cmpf oeq, %15, %16 : vector<1x8xf32>
    %18 = vector.broadcast %15 : vector<1x8xf32> to vector<256x8xf32>
    %19 = arith.mulf %13, %18 : vector<256x8xf32>
    %cst_15 = arith.constant -1.000000e+09 : f32
    %20 = vector.shape_cast %17 : vector<1x8xi1> to vector<1x8xi1>
    %21 = vector.broadcast %20 : vector<1x8xi1> to vector<256x8xi1>
    %22 = vector.broadcast %cst_15 : f32 to vector<256x8xf32>
    %23 = arith.select %21, %22, %19 : vector<256x8xi1>, vector<256x8xf32>
    %cst_16 = arith.constant dense<0xFF800000> : vector<256xf32>
    %24 = vector.multi_reduction <maximumf>, %23, %cst_16 [1] : vector<256x8xf32> to vector<256xf32>
    %25 = vector.shape_cast %24 : vector<256xf32> to vector<256x1xf32>
    %26 = vector.broadcast %25 : vector<256x1xf32> to vector<256x8xf32>
    %27 = arith.subf %23, %26 : vector<256x8xf32>
    %28 = math.exp %27 : vector<256x8xf32>
    %cst_17 = arith.constant dense<0.000000e+00> : vector<256xf32>
    %29 = vector.multi_reduction <add>, %28, %cst_17 [1] : vector<256x8xf32> to vector<256xf32>
    %30 = vector.shape_cast %29 : vector<256xf32> to vector<256x1xf32>
    %31 = tpu.reciprocal %30 {approx = true} : vector<256x1xf32> -> vector<256x1xf32>
    %32 = vector.broadcast %31 : vector<256x1xf32> to vector<256x8xf32>
    %33 = arith.mulf %28, %32 : vector<256x8xf32>
    %c0_18 = arith.constant 0 : index
    %c0_19 = arith.constant 0 : index
    %c0_20 = arith.constant 0 : index
    %34 = vector.load %arg4[%c0_18, %c0_19, %c0_20] : memref<1x8x128xf32, #tpu.memory_space<vmem>>, vector<1x8x128xf32>
    %35 = vector.shape_cast %34 : vector<1x8x128xf32> to vector<8x128xf32>
    %cst_21 = arith.constant dense<0.000000e+00> : vector<256x128xf32>
    %36 = tpu.matmul %33, %35, %cst_21 {dimension_numbers = #tpu.dot_dimension_numbers<[1], [0], [0], [1], [0, 0, 1, 1], [], []>} : vector<256x8xf32>, vector<8x128xf32>, vector<256x128xf32> -> vector<256x128xf32>
    %c0_22 = arith.constant 0 : index
    %c0_23 = arith.constant 0 : index
    %c0_24 = arith.constant 0 : index
    %37 = vector.load %arg10[%c0_22, %c0_23, %c0_24] : memref<1x256x128xf32, #tpu.memory_space<vmem>>, vector<1x256x128xf32>
    %38 = vector.shape_cast %37 : vector<1x256x128xf32> to vector<256x128xf32>
    %39 = vector.shape_cast %36 : vector<256x128xf32> to vector<1x256x128xf32>
    tpu.vector_store %arg10[%c0_22, %c0_23, %c0_24], %39 {strides = array<i32>} : memref<1x256x128xf32, #tpu.memory_space<vmem>>, vector<1x256x128xf32>,
    return
  }
  func.func @transform_0(%arg0: i32, %arg1: i32) -> (i32, i32, i32) {
    %c0_i32 = arith.constant 0 : i32
    %c0_i32_0 = arith.constant 0 : i32
    return %arg0, %arg1, %c0_i32 : i32, i32, i32
  }
  func.func @transform_1(%arg0: i32, %arg1: i32) -> (i32, i32, i32) {
    %c0_i32 = arith.constant 0 : i32
    %c0_i32_0 = arith.constant 0 : i32
    %c0_i32_1 = arith.constant 0 : i32
    return %arg0, %c0_i32, %c0_i32_0 : i32, i32, i32
  }
  func.func @transform_2(%arg0: i32, %arg1: i32) -> (i32, i32, i32) {
    %c0_i32 = arith.constant 0 : i32
    %c0_i32_0 = arith.constant 0 : i32
    %c0_i32_1 = arith.constant 0 : i32
    return %arg0, %c0_i32, %c0_i32_0 : i32, i32, i32
  }
  func.func @transform_3(%arg0: i32, %arg1: i32) -> (i32, i32, i32) {
    %c0_i32 = arith.constant 0 : i32
    %c0_i32_0 = arith.constant 0 : i32
    %c0_i32_1 = arith.constant 0 : i32
    return %arg0, %c0_i32, %c0_i32_0 : i32, i32, i32
  }
  func.func @transform_4(%arg0: i32, %arg1: i32) -> (i32, i32) {
    %c0_i32 = arith.constant 0 : i32
    %c0_i32_0 = arith.constant 0 : i32
    %c0_i32_1 = arith.constant 0 : i32
    return %c0_i32, %c0_i32_0 : i32, i32
  }
  func.func @transform_5(%arg0: i32, %arg1: i32) -> (i32, i32) {
    %c0_i32 = arith.constant 0 : i32
    %c0_i32_0 = arith.constant 0 : i32
    %c0_i32_1 = arith.constant 0 : i32
    return %c0_i32, %c0_i32_0 : i32, i32
  }
  func.func @transform_6(%arg0: i32, %arg1: i32) -> (i32, i32) {
    %c0_i32 = arith.constant 0 : i32
    %c0_i32_0 = arith.constant 0 : i32
    %c0_i32_1 = arith.constant 0 : i32
    return %c0_i32, %c0_i32_0 : i32, i32
  }
  func.func @transform_7(%arg0: i32, %arg1: i32) -> (i32, i32) {
    %c0_i32 = arith.constant 0 : i32
    %c0_i32_0 = arith.constant 0 : i32
    %c0_i32_1 = arith.constant 0 : i32
    return %c0_i32, %c0_i32_0 : i32, i32
  }
  func.func @transform_8(%arg0: i32, %arg1: i32) -> (i32, i32, i32) {
    %c0_i32 = arith.constant 0 : i32
    %c0_i32_0 = arith.constant 0 : i32
    return %arg0, %arg1, %c0_i32 : i32, i32, i32
  }
}

</mosaic_0001>

<bundles_post_ra>
// kernel: content_attention.1
= control target key start
LH: loop header
LB: loop body
LE: loop exit
PB: predicated region body
PF: predicated region fallthrough
CT: control target
= control target key end

     0   :  { %s3877_s0 = inlined_call_operand.hbm [shape: f32[2,256,128], index: 0, kind: input, shape index: {}]   ;;  %s3878_s1 = inlined_call_operand.vmem [shape: f32[2,8,128], index: 1, kind: input, shape index: {}]   ;;  %s3879_s2 = inlined_call_operand.hbm [shape: f32[2,8,128], index: 2, kind: input, shape index: {}]   ;;  %s3880_s3 = inlined_call_operand.vmem [shape: f32[2,1,8], index: 3, kind: input, shape index: {}]   ;;  %s3881_s4 = inlined_call_operand.hbm [shape: f32[128,128], index: 4, kind: input, shape index: {}]   ;;  %s3882_s5 = inlined_call_operand.vmem [shape: f32[1,128], index: 5, kind: input, shape index: {}]   ;;  %s3883_s6 = inlined_call_operand.hbm [shape: f32[128,128], index: 6, kind: input, shape index: {}]   ;;  %s3884_s7 = inlined_call_operand.vmem [shape: f32[1,128], index: 7, kind: input, shape index: {}]   ;;  %s3885_s8 = inlined_call_operand.hbm [shape: f32[2,256,128], index: 8, kind: output, shape index: {}]  }
   0x1   :  { %3896 = sst [smem:[#allocation22_spill]] %s3877_s0 }
   0x2   :  { %3897 = sst [smem:[#allocation23_spill]] %s3881_s4 }
   0x3   :  { %3898 = sst [smem:[#allocation24_spill]] %s3883_s6 }
   0x4   :  { %13 = vsyncpa [#allocation4], 0 }
   0x5   :  { %15 = vsyncpa [#allocation4 + $0x1], 0 }
   0x6   :  { %16 = vsyncpa [#allocation7], 0 }
   0x7   :  { %18 = vsyncpa [#allocation7 + $0x1], 0 }
   0x8   :  { %19 = vsyncpa [#allocation10], 0 }
   0x9   :  { %20 = vsyncpa [#allocation5], 0 }
   0xa   :  { %22 = vsyncpa [#allocation5 + $0x1], 0  ;;  %s2986_s27 = smov 0   ;;  %s2988_s28 = smov 0  }
   0xb   :  { %s2990_s29 = smov 0   ;;  %s2992_s30 = smov 0  }
   0xc   :  { %s2994_s9 = smov 0   ;;  %s2996_s10 = smov 0  }
   0xd LB: > { %3899 = sst [smem:[#allocation17_spill]] %s2906_s27  ;;  %s3017_s11 = sadd.s32 4294967295, %s2926_s10   ;;  %s2926_s10 = sphi %s2996_s10, %s28_s10   ;;  %s2922_s9 = sphi %s2994_s9, %s3934_s9   ;;  %s2918_s30 = sphi %s2992_s30, %s3933_s30   ;;  %s2914_s29 = sphi %s2990_s29, %s3929_s29   ;;  %s2910_s28 = sphi %s2988_s28, %s3932_s28   ;;  %s2906_s27 = sphi %s2986_s27, %s3931_s27  }
   0xe   : > { %3900 = sst [smem:[#allocation18_spill]] %s2914_s29  ;;  %s2030_s12 = sadd.s32 4294967294, %s2926_s10  }
   0xf   : > { %p62_p0 = scmp.ne.s32.totalorder %s2910_s28, %s2906_s27  ;;  %p3886_p1 = scmp.eq.s32.totalorder %s3017_s11, 0 }
  0x10   : > { %p256_p3 = scmp.eq.s32.totalorder %s2030_s12, 1  ;;  %p2031_p5 = scmp.ge.s32.totalorder %s2926_s10, 1 }
  0x11   : > { %p3026_p4 = por %p3886_p1, %p62_p0  ;;  %p263_p7 = scmp.lt.s32.totalorder %s2926_s10, 3 }
  0x12   : > { %p3031_p6 = por %p256_p3, %p62_p0  ;;  %s2928_s16 = smov [#allocation8]  }
  0x13   : > { %s3901_s13 = scalar_select %p3026_p4, 1, 0 }
  0x14   : > { %s3902_s14 = scalar_select %p3031_p6, 1, 0 }
  0x15   : > { %p3036_p8 = pnand %p2031_p5, %p263_p7  ;;  %s275_s17 = sshll.u32 %s2928_s16, 4  ;;  %s3040_s17 = int_to_ptr.vmem [resolvable:$true] %s275_s17 }
  0x16   : > { %3903 = sst [smem:[#allocation19_spill]] %s3902_s14  ;;  %s2929_s19 = smov [#allocation9]  }
  0x17   : > { %s3904_s15 = scalar_select %p3036_p8, 1, 0 }
  0x18   : > { %p2506_p9 = pneg %p3036_p8  ;;  %s291_s20 = sshll.u32 %s2929_s19, 4  ;;  %s3051_s20 = int_to_ptr.vmem [resolvable:$true] %s291_s20 }
  0x19   : > { %s3906_s4 = sld [smem:[#allocation23_spill]] }
  0x1a   : > { %p3047_p11 = pnand %p2506_p9, %p3886_p1 }
  0x1c   : > { %p2718_p13 = pneg %p3047_p11 }
  0x1f   : > { %s2716_s23 = scalar_lea.hbm %s3906_s4, 2048 }
  0x20   : > { %p2717_p12 = scmp.ne.s32.totalorder %s3906_s4, %s2716_s23  ;;  %p2723_p5 = scmp.lt.u32.totalorder %s2716_s23, %s3906_s4 }
  0x22   : > { %p2719_p0 = pnand %p2718_p13, %p2717_p12 }
  0x24   : > { %p2720_p3 = pneg %p2719_p0 }
  0x26   : > { %p2725_p7 = pnand %p2723_p5, %p2720_p3 }
  0x28   : > { %2728 = shalt.err (!%p2725_p7)
}
  0x29   : > { %s2729_s16 = scalar_lea.vmem %s3040_s17, 2048  ;;  %p2737_p2 = scmp.lt.s32.totalorder %s3040_s17, %s3040_s17 }
  0x2a   : > { %p2730_p9 = scmp.ne.s32.totalorder %s3040_s17, %s2729_s16  ;;  %p2738_p12 = scmp.lt.s32.totalorder %s2729_s16, %s2729_s16 }
  0x2c   : > { %p2732_p10 = pnand %p2730_p9, %p2718_p13  ;;  %p2739_p0 = por %p2738_p12, %p2737_p2 }
  0x2e   : > { %p2733_p1 = pneg %p2732_p10 }
  0x30   : > { %p2740_p6 = pnand %p2739_p0, %p2733_p1 }
  0x32   : > { %2743 = shalt.err (!%p2740_p6)
}
  0x33   : > { %s3889_s19 = smov 128   ;;  %s3890_s21 = smov 8  }
  0x34   : > { %2509 = dma.hbm_to_vmem [thread:$0]  (!%p3047_p11), %s3906_s4, 2048, %s3040_s17, [#allocation7], %s3889_s19, %s3889_s19, %s3890_s21  }
  0x35   : > { %s3907_s6 = sld [smem:[#allocation24_spill]] }
  0x3b   : > { %s2744_s26 = scalar_lea.hbm %s3907_s6, 2048 }
  0x3c   : > { %p2745_p1 = scmp.ne.s32.totalorder %s3907_s6, %s2744_s26  ;;  %p2751_p10 = scmp.lt.u32.totalorder %s2744_s26, %s3907_s6 }
  0x3e   : > { %p2747_p2 = pnand %p2745_p1, %p2718_p13 }
  0x40   : > { %p2748_p6 = pneg %p2747_p2 }
  0x42   : > { %p2753_p3 = pnand %p2751_p10, %p2748_p6 }
  0x44   : > { %2756 = shalt.err (!%p2753_p3)
}
  0x45   : > { %s2757_s17 = scalar_lea.vmem %s3051_s20, 2048  ;;  %p2765_p12 = scmp.lt.s32.totalorder %s3051_s20, %s3051_s20 }
  0x46   : > { %p2758_p5 = scmp.ne.s32.totalorder %s3051_s20, %s2757_s17  ;;  %p2766_p0 = scmp.lt.s32.totalorder %s2757_s17, %s2757_s17 }
  0x48   : > { %p2760_p7 = pnand %p2758_p5, %p2718_p13  ;;  %p2767_p1 = por %p2766_p0, %p2765_p12 }
  0x4a   : > { %p2761_p9 = pneg %p2760_p7 }
  0x4c   : > { %p2768_p2 = pnand %p2767_p1, %p2761_p9 }
  0x4e   : > { %2771 = shalt.err (!%p2768_p2)
}
  0x4f   : > { %2512 = dma.hbm_to_vmem [thread:$0]  (!%p3047_p11), %s3907_s6, 2048, %s3051_s20, [#allocation10], %s3889_s19, %s3889_s19, %s3890_s21  }
  0x50   : > { %s40_s18 = sadd.s32 1, %s2922_s9  ;;  %s49_s22 = sadd.s32 1, %s2914_s29 }
  0x51   : > { %p42_p13 = scmp.ge.s32.totalorder %s40_s18, 2  ;;  %p56_p6 = scmp.ne.s32.totalorder %s2914_s29, %s2910_s28 }
  0x52   : > { %p57_p10 = scmp.eq.s32.totalorder %s2926_s10, 0  ;;  %p2526_p3 = scmp.lt.s32.totalorder %s2926_s10, 2 }
  0x53   : > { %s3936_s18 = smov (%p42_p13, %s40_s18), 0  ;;  %p3909_p7 = scmp.eq.s32.totalorder %s3017_s11, 1 }
  0x54   : > { %3908 = sst [smem:[#allocation20_spill]] %s3936_s18  ;;  %p58_p5 = por %p57_p10, %p56_p6 }
  0x55   : > { %p3121_p9 = por %p3909_p7, %p56_p6  ;;  %s44_s24 = ssub.s32 %s2922_s9, %s3936_s18 }
  0x56   : > { %s3128_s25 = sand.u32 1, %s2914_s29   ;;  %p47_p11 = scmp.eq.s32.totalorder %s44_s24, 0 }
  0x57   : > { %s3910_s23 = scalar_select %p3121_p9, 1, 0 }
  0x58   : > { %s2035_s20 = sshll.u32 %s3128_s25, 8  ;;  %s2086_s26 = sshll.u32 %s2922_s9, 12 }
  0x59   : > { %s3133_s12 = scalar_select %p47_p11, %s2914_s29, %s49_s22  }
  0x5a   : > { %s3912_s0 = sld [smem:[#allocation22_spill]]  ;;  %s312_s14 = scalar_lea.vmem [#allocation3], %s2035_s20 }
  0x5b   : > { %3911 = sst [smem:[#allocation21_spill]] %s3133_s12  ;;  %s321_s19 = sshll.u32 %s312_s14, 4  ;;  %s3146_s19 = int_to_ptr.vmem [resolvable:$true] %s321_s19 }
  0x5c   : > { %p3142_p12 = pnand %p2526_p3, %p58_p5  ;;  %s309_s24 = scalar_lea.sflag [#allocation4], %s3128_s25 }
  0x5e   : > { %p2774_p1 = pneg %p3142_p12 }
  0x60   : > { %s3138_s27 = scalar_lea.hbm %s3912_s0, %s2086_s26  ;;  %s2777_s17 = scalar_lea.hbm %s3912_s0, 8192 }
  0x61   : > { %s2772_s16 = scalar_lea.hbm %s3138_s27, 4096  ;;  %p2778_p6 = scmp.lt.u32.totalorder %s3138_s27, %s3912_s0 }
  0x62   : > { %p2773_p0 = scmp.ne.s32.totalorder %s3138_s27, %s2772_s16  ;;  %p2779_p10 = scmp.lt.u32.totalorder %s2777_s17, %s2772_s16 }
  0x63   : > { %p2781_p5 = scmp.lt.u32.totalorder %s2772_s16, %s3138_s27 }
  0x64   : > { %p2775_p2 = pnand %p2774_p1, %p2773_p0  ;;  %p2780_p3 = por %p2779_p10, %p2778_p6 }
  0x66   : > { %p2776_p13 = pneg %p2775_p2  ;;  %p2782_p7 = por %p2781_p5, %p2780_p3 }
  0x68   : > { %p2783_p11 = pnand %p2782_p7, %p2776_p13 }
  0x6a   : > { %2786 = shalt.err (!%p2783_p11)
}
  0x6b   : > { %s2787_s22 = scalar_lea.vmem %s3146_s19, 4096  ;;  %s2932_s20 = smov [#allocation3]  }
  0x6c   : > { %p2788_p0 = scmp.ne.s32.totalorder %s3146_s19, %s2787_s22  ;;  %s2792_s26 = sshll.u32 %s2932_s20, 4  ;;  %s2793_s26 = int_to_ptr.vmem [resolvable:$false] %s2792_s26 }
  0x6d   : > { %s2794_s4 = scalar_lea.vmem %s2793_s26, 8192  ;;  %p2795_p4 = scmp.lt.s32.totalorder %s3146_s19, %s2793_s26 }
  0x6e   : > { %p2790_p2 = pnand %p2788_p0, %p2774_p1  ;;  %p2796_p6 = scmp.lt.s32.totalorder %s2794_s4, %s2787_s22 }
  0x70   : > { %p2791_p9 = pneg %p2790_p2  ;;  %p2797_p10 = por %p2796_p6, %p2795_p4 }
  0x72   : > { %p2798_p3 = pnand %p2797_p10, %p2791_p9 }
  0x74   : > { %2801 = shalt.err (!%p2798_p3)
}
  0x75   : > { %s3914_s16 = smov 8   ;;  %s3915_s17 = smov 128  }
  0x76   : > { %2516 = dma.hbm_to_vmem [thread:$0]  (!%p3142_p12), %s3138_s27, 4096, %s3146_s19, %s309_s24, %s3915_s17, %s3915_s17, %s3914_s16  }
  0x77   : > { %s2038_s14 = sshll.u32 %s3128_s25, 3  ;;  %s2039_s20 = sshll.u32 %s2922_s9, 7 }
  0x78   : > { %s3185_s4 = scalar_lea.hbm %s3879_s2, %s2039_s20  ;;  %s342_s0 = scalar_lea.vmem [#allocation6], %s2038_s14 }
  0x79   : > { %s349_s6 = sshll.u32 %s342_s0, 4  ;;  %s3916_s18 = sand.u32 1, %s2926_s10   ;;  %s350_s6 = int_to_ptr.vmem [resolvable:$true] %s349_s6 }
  0x7a   : > { %s339_s12 = scalar_lea.sflag [#allocation7], %s3916_s18  ;;  %s2802_s29 = scalar_lea.hbm %s3185_s4, 128 }
  0x7b   : > { %p2803_p4 = scmp.ne.s32.totalorder %s3185_s4, %s2802_s29  ;;  %s2807_s27 = scalar_lea.hbm %s3879_s2, 256 }
  0x7c   : > { %p2808_p5 = scmp.lt.u32.totalorder %s3185_s4, %s3879_s2  ;;  %p2809_p7 = scmp.lt.u32.totalorder %s2807_s27, %s2802_s29 }
  0x7d   : > { %p2805_p9 = pnand %p2803_p4, %p2774_p1  ;;  %p2811_p0 = scmp.lt.u32.totalorder %s2802_s29, %s3185_s4 }
  0x7e   : > { %p2810_p11 = por %p2809_p7, %p2808_p5 }
  0x7f   : > { %p2806_p13 = pneg %p2805_p9 }
  0x80   : > { %p2812_p2 = por %p2811_p0, %p2810_p11 }
  0x82   : > { %p2813_p6 = pnand %p2812_p2, %p2806_p13 }
  0x84   : > { %2816 = shalt.err (!%p2813_p6)
}
  0x85   : > { %s2817_s0 = scalar_lea.vmem %s350_s6, 128  ;;  %s2933_s18 = smov [#allocation6]  }
  0x86   : > { %p2818_p10 = scmp.ne.s32.totalorder %s350_s6, %s2817_s0  ;;  %s2822_s17 = sshll.u32 %s2933_s18, 4  ;;  %s2823_s17 = int_to_ptr.vmem [resolvable:$false] %s2822_s17 }
  0x87   : > { %s2824_s14 = scalar_lea.vmem %s2823_s17, 256  ;;  %p2825_p9 = scmp.lt.s32.totalorder %s350_s6, %s2823_s17 }
  0x88   : > { %p2820_p3 = pnand %p2818_p10, %p2774_p1  ;;  %p2826_p8 = scmp.lt.s32.totalorder %s2824_s14, %s2817_s0 }
  0x8a   : > { %p2821_p4 = pneg %p2820_p3  ;;  %p2827_p5 = por %p2826_p8, %p2825_p9 }
  0x8c   : > { %p2828_p7 = pnand %p2827_p5, %p2821_p4 }
  0x8e   : > { %2831 = shalt.err (!%p2828_p7)
}
  0x8f   : > { %2519 = dma.hbm_to_vmem [thread:$0]  (!%p3142_p12), %s3185_s4, 128, %s350_s6, %s339_s12  }
  0x90   : > { %p3917_p13 = scmp.ne.s32.totalorder %s3904_s15, 0 }
  0x91   : > { %s3211_s29 = sand.u32 (!%p3917_p13), 1, %s2910_s28   ;;  %p3918_p8 = scmp.ne.s32.totalorder (!%p3917_p13), %s3901_s13, 0 }
  0x92   : > { %364 = sbr.rel (%p3917_p13) target bundleno = 1269 (0x4f5), region = 52  ;;  %s2041_s20 = sshll.u32 (!%p3917_p13), %s3211_s29, 8 }
  0x93   : > { %s367_s22 = scalar_lea.sflag (!%p3917_p13), [#allocation4], %s3211_s29  ;;  %s3217_s26 = scalar_lea.vmem (!%p3917_p13), [#allocation3], %s2041_s20 }
  0x99   : > { %2885 = dma.done.wait (%p3918_p8), %s367_s22, 4096  }
  0x9a   : > { %2887 = vsyncadd (%p3918_p8), %s367_s22, 4294963200  ;;  %s375_s6 = sand.u32 1, %s3017_s11   ;;  %s2042_s15 = sshll.u32 %s3211_s29, 3 }
  0x9b   : > { %s376_s21 = scalar_lea.sflag [#allocation7], %s375_s6  ;;  %s3225_s12 = scalar_lea.vmem [#allocation6], %s2042_s15 }
  0x9c   : > { %2889 = dma.done.wait (%p3918_p8), %s376_s21, 128  }
  0x9d   : > { %2891 = vsyncadd (%p3918_p8), %s376_s21, 4294967168  ;;  %p3919_p12 = scmp.eq.s32.totalorder %s3017_s11, 0 }
  0x9f   : > { %2893 = dma.done.wait (%p3919_p12), [#allocation7], 2048   ;;  %p3920_p1 = pmov %p3919_p12 }
  0xa1   : > { %2895 = vsyncadd (%p3920_p1), [#allocation7], 4294965248  ;;  %p3921_p11 = pmov %p3920_p1 }
  0xa2   : > { %p3922_p0 = pmov %p3920_p1 }
  0xa3   : > { %2897 = dma.done.wait (%p3921_p11), [#allocation10], 2048  }
  0xa4   : > { %2899 = vsyncadd (%p3922_p0), [#allocation10], 4294965248  ;;  %v2934_v0 = vmov 0.0|0.0   ;;  %vm2935_vm0 = vmmov 0   ;;  %v2936_v1 = vmov 0.0   ;;  %v446_v2 = vld [vmem:[#allocation9] sm:$0xff] }
  0xa5   : > { %2434 = vmatprep.subr.bf16.mxu0 %v2934_v0  ;;  %2251 = vmatprep.mubr.msk.f32.mxu0 %vm2935_vm0, %v2936_v1  ;;  %v447_v3 = vld [vmem:[#allocation9 + $0x8] sm:$0xff]  ;;  %v572_v4 = vld [vmem:[#allocation8] sm:$0xff]  ;;  %v448_v7 = vld [vmem:[#allocation9 + $0x10] sm:$0xff]  ;;  %p433_p2 = scmp.lt.s32.totalorder %s2918_s30, 1  ;;  %vm1156_vm3 = vcmask 64512   ;;  %s3787_s22 = scalar_lea.vmem [#allocation11], %s2041_s20 }
  0xa6   : > { %v2435_v5 = vpack.c.bf16 %v447_v3, %v446_v2  ;;  %v573_v6 = vld [vmem:[#allocation8 + $0x8] sm:$0xff]  ;;  %v449_v8 = vld [vmem:[#allocation9 + $0x18] sm:$0xff]  ;;  %v574_v10 = vld [vmem:[#allocation8 + $0x10] sm:$0xff]  ;;  %s2087_s20 = sshll.u32 %s2918_s30, 12  ;;  %p3923_p10 = scmp.ne.s32.totalorder %s3910_s23, 0 }
  0xa7   : > { %v2458_v9 = vpack.c.bf16 %v573_v6, %v572_v4  ;;  %v575_v11 = vld [vmem:[#allocation8 + $0x18] sm:$0xff]  ;;  %v2438_v12 = vpack.c.bf16 %v449_v8, %v448_v7  ;;  %v576_v14 = vld [vmem:[#allocation8 + $0x20] sm:$0xff]  ;;  %v577_v15 = vld [vmem:[#allocation8 + $0x28] sm:$0xff]  ;;  %s3248_s11 = scalar_select %p433_p2, %s2918_s30, 1 }
  0xa8   : > { %2436 = vmatpush3.bf16.msra.mxu0 %v2435_v5  ;;  %v2462_v13 = vpack.c.bf16 %v575_v11, %v574_v10  ;;  %v450_v16 = vld [vmem:[#allocation9 + $0x20] sm:$0xff]  ;;  %v451_v17 = vld [vmem:[#allocation9 + $0x28] sm:$0xff]  ;;  %v2466_v18 = vpack.c.bf16 %v577_v15, %v576_v14  ;;  %v578_v20 = vld [vmem:[#allocation8 + $0x30] sm:$0xff]  ;;  %s3824_s21 = scalar_lea.hbm %s3885_s8, %s2087_s20  ;;  %s2938_s30 = smov [#allocation11]  }
  0xa9   : > { %2459 = vmatprep.subr.bf16.mxu1 %v2458_v9  ;;  %2437 = vmatprep.subr.bf16.mxu0 %v2934_v0  ;;  %v2441_v19 = vpack.c.bf16 %v451_v17, %v450_v16  ;;  %v579_v21 = vld [vmem:[#allocation8 + $0x38] sm:$0xff]  ;;  %v452_v22 = vld [vmem:[#allocation9 + $0x30] sm:$0xff]  ;;  %v580_v26 = vld [vmem:[#allocation8 + $0x40] sm:$0xff]  ;;  %s2046_s13 = sshll.u32 %s3248_s11, 3  ;;  %s439_s14 = scalar_lea.vmem %s3880_s3, %s3248_s11 }
  0xaa   : > { %2461 = vmatpush3.bf16.msra.mxu1 %v2458_v9  ;;  %v453_v23 = vld [vmem:[#allocation9 + $0x38] sm:$0xff]  ;;  %v2470_v24 = vpack.c.bf16 %v579_v21, %v578_v20  ;;  %v581_v27 = vld [vmem:[#allocation8 + $0x48] sm:$0xff]  ;;  %v540_v28 = vld [vmem:[%s3217_s26] sm:$0xff]  ;;  %s436_s25 = scalar_lea.vmem %s3878_s1, %s2046_s13  ;;  %s2836_s13 = sshll.u32 %s2938_s30, 4  ;;  %s2837_s13 = int_to_ptr.vmem [resolvable:$false] %s2836_s13 }
  0xab   : > { %2463 = vmatprep.subr.bf16.mxu1 %v2462_v13  ;;  %v2444_v25 = vpack.c.bf16 %v453_v23, %v452_v22  ;;  %v454_v29 = vld [vmem:[#allocation9 + $0x40] sm:$0xff]  ;;  %v455_v30 = vld [vmem:[#allocation9 + $0x48] sm:$0xff]  ;;  %2286 = vmatprep.mubr.f32.mxu1 %v540_v28  ;;  %v2474_v31 = vpack.c.bf16 %v581_v27, %v580_v26  ;;  %v582_v33 = vld [vmem:[#allocation8 + $0x50] sm:$0xff]  ;;  %s2838_s4 = scalar_lea.vmem %s2837_s13, 8192 }
  0xac   : > { %2439 = vmatpush3.bf16.msra.mxu0 %v2438_v12  ;;  %v2447_v32 = vpack.c.bf16 %v455_v30, %v454_v29  ;;  %v583_v34 = vld [vmem:[#allocation8 + $0x58] sm:$0xff]  ;;  %v456_v35 = vld [vmem:[#allocation9 + $0x50] sm:$0xff]  ;;  %v584_v39 = vld [vmem:[#allocation8 + $0x60] sm:$0xff] }
  0xad   : > { %2440 = vmatprep.subr.bf16.mxu0 %v2934_v0  ;;  %v457_v36 = vld [vmem:[#allocation9 + $0x58] sm:$0xff]  ;;  %v2478_v37 = vpack.c.bf16 %v583_v34, %v582_v33  ;;  %v585_v40 = vld [vmem:[#allocation8 + $0x68] sm:$0xff]  ;;  %v458_v41 = vld [vmem:[#allocation9 + $0x60] sm:$0xff] }
  0xae   : > { %2465 = vmatpush3.bf16.msra.mxu1 %v2462_v13  ;;  %v2450_v38 = vpack.c.bf16 %v457_v36, %v456_v35  ;;  %v459_v42 = vld [vmem:[#allocation9 + $0x68] sm:$0xff]  ;;  %v2482_v43 = vpack.c.bf16 %v585_v40, %v584_v39  ;;  %v586_v45 = vld [vmem:[#allocation8 + $0x70] sm:$0xff]  ;;  %v587_v46 = vld [vmem:[#allocation8 + $0x78] sm:$0xff] }
  0xaf   : > { %2467 = vmatprep.subr.bf16.mxu1 %v2466_v18  ;;  %v2453_v44 = vpack.c.bf16 %v459_v42, %v458_v41  ;;  %v460_v47 = vld [vmem:[#allocation9 + $0x70] sm:$0xff]  ;;  %v461_v48 = vld [vmem:[#allocation9 + $0x78] sm:$0xff]  ;;  %v2486_v49 = vpack.c.bf16 %v587_v46, %v586_v45  ;;  %v542_v53 = vld [vmem:[%s3217_s26 + $0x10] sm:$0xff] }
  0xb0   : > { %2442 = vmatpush3.bf16.msra.mxu0 %v2441_v19  ;;  %v2456_v50 = vpack.c.bf16 %v461_v48, %v460_v47  ;;  %v445_v51 = vld [vmem:[%s436_s25] sm:$0xff]  ;;  %v541_v52 = vld [vmem:[%s3217_s26 + $0x8] sm:$0xff]  ;;  %v543_v54 = vld [vmem:[%s3217_s26 + $0x18] sm:$0xff] }
  0xb1   : > { %2443 = vmatprep.subr.bf16.mxu0 %v2934_v0  ;;  %v544_v55 = vld [vmem:[%s3217_s26 + $0x20] sm:$0xff]  ;;  %v545_v56 = vld [vmem:[%s3217_s26 + $0x28] sm:$0xff]  ;;  %v546_v57 = vld [vmem:[%s3217_s26 + $0x30] sm:$0xff] }
  0xb2   : > { %2469 = vmatpush3.bf16.msra.mxu1 %v2466_v18  ;;  %v547_v58 = vld [vmem:[%s3217_s26 + $0x38] sm:$0xff]  ;;  %v548_v59 = vld [vmem:[%s3217_s26 + $0x40] sm:$0xff]  ;;  %v549_v60 = vld [vmem:[%s3217_s26 + $0x48] sm:$0xff] }
  0xb3   : > { %2471 = vmatprep.subr.bf16.mxu1 %v2470_v24  ;;  %v550_v61 = vld [vmem:[%s3217_s26 + $0x50] sm:$0xff]  ;;  %v551_v62 = vld [vmem:[%s3217_s26 + $0x58] sm:$0xff]  ;;  %v552_v63 = vld [vmem:[%s3217_s26 + $0x60] sm:$0xff] }
  0xb4   : > { %2445 = vmatpush3.bf16.msra.mxu0 %v2444_v25  ;;  %v554_v1 = vld [vmem:[%s3217_s26 + $0x70] sm:$0xff]  ;;  %v555_v2 = vld [vmem:[%s3217_s26 + $0x78] sm:$0xff]  ;;  %v556_v3 = vld [vmem:[%s3217_s26 + $0x80] sm:$0xff] }
  0xb5   : > { %2446 = vmatprep.subr.bf16.mxu0 %v2934_v0  ;;  %v557_v4 = vld [vmem:[%s3217_s26 + $0x88] sm:$0xff]  ;;  %v558_v5 = vld [vmem:[%s3217_s26 + $0x90] sm:$0xff]  ;;  %v559_v6 = vld [vmem:[%s3217_s26 + $0x98] sm:$0xff] }
  0xb6   : > { %2473 = vmatpush3.bf16.msra.mxu1 %v2470_v24  ;;  %v560_v7 = vld [vmem:[%s3217_s26 + $0xa0] sm:$0xff]  ;;  %v561_v8 = vld [vmem:[%s3217_s26 + $0xa8] sm:$0xff]  ;;  %v562_v9 = vld [vmem:[%s3217_s26 + $0xb0] sm:$0xff] }
  0xb7   : > { %2475 = vmatprep.subr.bf16.mxu1 %v2474_v31  ;;  %v563_v10 = vld [vmem:[%s3217_s26 + $0xb8] sm:$0xff]  ;;  %v564_v11 = vld [vmem:[%s3217_s26 + $0xc0] sm:$0xff]  ;;  %v565_v12 = vld [vmem:[%s3217_s26 + $0xc8] sm:$0xff] }
  0xb8   : > { %2448 = vmatpush3.bf16.msra.mxu0 %v2447_v32  ;;  %v566_v13 = vld [vmem:[%s3217_s26 + $0xd0] sm:$0xff]  ;;  %v567_v14 = vld [vmem:[%s3217_s26 + $0xd8] sm:$0xff]  ;;  %v568_v15 = vld [vmem:[%s3217_s26 + $0xe0] sm:$0xff] }
  0xb9   : > { %2449 = vmatprep.subr.bf16.mxu0 %v2934_v0  ;;  %v569_v16 = vld [vmem:[%s3217_s26 + $0xe8] sm:$0xff]  ;;  %v570_v17 = vld [vmem:[%s3217_s26 + $0xf0] sm:$0xff]  ;;  %v571_v18 = vld [vmem:[%s3217_s26 + $0xf8] sm:$0xff] }
  0xba   : > { %2477 = vmatpush3.bf16.msra.mxu1 %v2474_v31  ;;  %v2047_v19 = vld [vmem:[%s3884_s7] ss:$0 sm:$0xff] }
  0xbb   : > { %2479 = vmatprep.subr.bf16.mxu1 %v2478_v37  ;;  %v3293_v23 = vld [vmem:[%s3882_s5] ss:$0 sm:$0xff] }
  0xbc   : > { %2451 = vmatpush3.bf16.msra.mxu0 %v2450_v38 }
  0xbd   : > { %2452 = vmatprep.subr.bf16.mxu0 %v2934_v0 }
  0xbe   : > { %2481 = vmatpush3.bf16.msra.mxu1 %v2478_v37 }
  0xbf   : > { %2483 = vmatprep.subr.bf16.mxu1 %v2482_v43 }
  0xc0   : > { %2454 = vmatpush3.bf16.msra.mxu0 %v2453_v44 }
  0xc1   : > { %2455 = vmatprep.subr.bf16.mxu0 %v2934_v0  ;;  %v553_v0 = vld [vmem:[%s3217_s26 + $0x68] sm:$0xff]  ;;  %s1879_s26 = sshll.u32 %s3787_s22, 4  ;;  %s3826_s26 = int_to_ptr.vmem [resolvable:$true] %s1879_s26 }
  0xc2   : > { %2485 = vmatpush3.bf16.msra.mxu1 %v2482_v43  ;;  %s2832_s11 = scalar_lea.vmem %s3826_s26, 4096  ;;  %p2839_p9 = scmp.lt.s32.totalorder %s3826_s26, %s2837_s13 }
  0xc3   : > { %2487 = vmatprep.subr.bf16.mxu1 %v2486_v49  ;;  %p2833_p6 = scmp.ne.s32.totalorder %s3826_s26, %s2832_s11  ;;  %p2840_p5 = scmp.lt.s32.totalorder %s2838_s4, %s2832_s11 }
  0xc4   : > { %2457 = vmatpush3.bf16.msra.mxu0 %v2456_v50 }
  0xc5   : > { %p2834_p3 = pnand %p2833_p6, %p3923_p10  ;;  %p2841_p7 = por %p2840_p5, %p2839_p9 }
  0xc6   : > { %2489 = vmatpush3.bf16.msra.mxu1 %v2486_v49 }
  0xc7   : > { %2252 = vmatmul.mubr.f32.vlgmr.msra.gmra.mrb[0].mxu0 %v445_v51  ;;  %p2835_p4 = pneg %p2834_p3 }
  0xc9   : > { %2287 = vmatmul.mubr.f32.vlgmr.msra.gmra.mrb[0].mxu1 %v541_v52  ;;  %p2842_p13 = pnand %p2841_p7, %p2835_p4 }
  0xca   : > { %2289 = vmatprep.mubr.f32.mxu1 %v542_v53 }
  0xcd   : > { %2290 = vmatmul.mubr.f32.gmra.mrb[2].mxu1 %v543_v54 }
  0xce   : > { %2292 = vmatprep.mubr.f32.mxu1 %v544_v55 }
  0xd1   : > { %2293 = vmatmul.mubr.f32.gmra.mrb[4].mxu1 %v545_v56 }
  0xd2   : > { %2295 = vmatprep.mubr.f32.mxu1 %v546_v57 }
  0xd5   : > { %2296 = vmatmul.mubr.f32.gmra.mrb[6].mxu1 %v547_v58 }
  0xd6   : > { %2298 = vmatprep.mubr.f32.mxu1 %v548_v59 }
  0xd9   : > { %2299 = vmatmul.mubr.f32.gmra.mrb[8].mxu1 %v549_v60 }
  0xda   : > { %2301 = vmatprep.mubr.f32.mxu1 %v550_v61 }
  0xdd   : > { %2302 = vmatmul.mubr.f32.gmra.mrb[10].mxu1 %v551_v62 }
  0xde   : > { %2304 = vmatprep.mubr.f32.mxu1 %v552_v63 }
  0xe1   : > { %2305 = vmatmul.mubr.f32.gmra.mrb[12].mxu1 %v553_v0 }
  0xe2   : > { %2307 = vmatprep.mubr.f32.mxu1 %v554_v1 }
  0xe5   : > { %2308 = vmatmul.mubr.f32.gmra.mrb[14].mxu1 %v555_v2 }
  0xe6   : > { %2310 = vmatprep.mubr.f32.mxu1 %v556_v3 }
  0xe9   : > { %2311 = vmatmul.mubr.f32.gmra.mrb[16].mxu1 %v557_v4 }
  0xea   : > { %2313 = vmatprep.mubr.f32.mxu1 %v558_v5 }
  0xed   : > { %2314 = vmatmul.mubr.f32.gmra.mrb[18].mxu1 %v559_v6 }
  0xee   : > { %2316 = vmatprep.mubr.f32.mxu1 %v560_v7 }
  0xf1   : > { %2317 = vmatmul.mubr.f32.gmra.mrb[20].mxu1 %v561_v8 }
  0xf2   : > { %2319 = vmatprep.mubr.f32.mxu1 %v562_v9 }
  0xf5   : > { %2320 = vmatmul.mubr.f32.gmra.mrb[22].mxu1 %v563_v10 }
  0xf6   : > { %2322 = vmatprep.mubr.f32.mxu1 %v564_v11 }
  0xf9   : > { %2323 = vmatmul.mubr.f32.gmra.mrb[24].mxu1 %v565_v12 }
  0xfa   : > { %2325 = vmatprep.mubr.f32.mxu1 %v566_v13 }
  0xfd   : > { %2326 = vmatmul.mubr.f32.gmra.mrb[26].mxu1 %v567_v14 }
  0xfe   : > { %2328 = vmatprep.mubr.f32.mxu1 %v568_v15 }
 0x101   : > { %2329 = vmatmul.mubr.f32.gmra.mrb[28].mxu1 %v569_v16 }
 0x102   : > { %2331 = vmatprep.mubr.f32.mxu1 %v570_v17 }
 0x105   : > { %2332 = vmatmul.mubr.f32.gmra.mrb[30].mxu1 %v571_v18 }
 0x19a   : > { %v535_v20 = vpop.f32.mrb[0].mxu0 }
 0x19b   : > { %v536_v21 = vadd.f32 %v2047_v19, %v535_v20  ;;  %v2253_v22 = vpop.f32.mrb[1].mxu0 }
 0x19c   : > { %v2288_v24 = vpop.f32.mrb[0].mxu1 }
 0x19d   : > { %v661_v25 = vpop.f32.mrb[1].mxu1  ;;  %2334 = vmatprep.subr.mxu0 %v536_v21  ;;  %v667_v27 = vadd.f32 %v2288_v24, %v3293_v23 }
 0x19e   : > { %v662_v26 = vadd.f32 %v3293_v23, %v661_v25  ;;  %2335 = vmatpush3.xpose.msra.mxu0 %v536_v21  ;;  %v1081_v25 = vlaneseq }
 0x1a0   : > { %v2291_v28 = vpop.f32.mrb[2].mxu1  ;;  %2336 = vmatprep.mubr.f32.mxu0 %v662_v26  ;;  %v1078_v26 = vld [vmem:[%s439_s14] sm:$0x1] }
 0x1a1   : > { %v671_v29 = vpop.f32.mrb[3].mxu1  ;;  %2337 = vmatmul.mubr.f32.vlgmr.msra.gmra.mrb[2].mxu0 %v667_v27  ;;  %v677_v31 = vadd.f32 %v2291_v28, %v3293_v23  ;;  %v1082_v27 = vshrl.u32 %v1081_v25, 7  ;;  %vm1079_vm1 = vcmp.eq.f32.partialorder %v1078_v26, 0.0 }
 0x1a2   : > { %v672_v30 = vadd.f32 %v3293_v23, %v671_v29  ;;  %v2937_v29 = vmov 0  }
 0x1a3   : > { %v1083_v28 = vsub.s32 0, %v1082_v27 }
 0x1a4   : > { %v2294_v32 = vpop.f32.mrb[4].mxu1  ;;  %2339 = vmatprep.mubr.f32.mxu0 %v672_v30  ;;  %v1118_v30 = vsel %vm1079_vm1, 1, %v2937_v29 }
 0x1a5   : > { %v681_v33 = vpop.f32.mrb[5].mxu1  ;;  %2340 = vmatmul.mubr.f32.gmra.mrb[4].mxu0 %v677_v31  ;;  %v687_v35 = vadd.f32 %v2294_v32, %v3293_v23  ;;  %v3331_v31 = vrot.slane %v1118_v30, %v1083_v28  ;;  %v3333_v32 = vrot.slane %v1078_v26, %v1083_v28 }
 0x1a6   : > { %v682_v34 = vadd.f32 %v3293_v23, %v681_v33 }
 0x1a7   : > { %vm1123_vm2 = vcmp.eq.s32.totalorder %v3331_v31, 1 }
 0x1a8   : > { %v2297_v36 = vpop.f32.mrb[6].mxu1  ;;  %2342 = vmatprep.mubr.f32.mxu0 %v682_v34 }
 0x1a9   : > { %v691_v37 = vpop.f32.mrb[7].mxu1  ;;  %2343 = vmatmul.mubr.f32.gmra.mrb[6].mxu0 %v687_v35  ;;  %v697_v39 = vadd.f32 %v2297_v36, %v3293_v23 }
 0x1aa   : > { %v692_v38 = vadd.f32 %v3293_v23, %v691_v37 }
 0x1ac   : > { %v2300_v40 = vpop.f32.mrb[8].mxu1  ;;  %2345 = vmatprep.mubr.f32.mxu0 %v692_v38 }
 0x1ad   : > { %v701_v41 = vpop.f32.mrb[9].mxu1  ;;  %2346 = vmatmul.mubr.f32.gmra.mrb[8].mxu0 %v697_v39  ;;  %v707_v43 = vadd.f32 %v2300_v40, %v3293_v23 }
 0x1ae   : > { %v702_v42 = vadd.f32 %v3293_v23, %v701_v41 }
 0x1b0   : > { %v2303_v44 = vpop.f32.mrb[10].mxu1  ;;  %2348 = vmatprep.mubr.f32.mxu0 %v702_v42 }
 0x1b1   : > { %v711_v45 = vpop.f32.mrb[11].mxu1  ;;  %2349 = vmatmul.mubr.f32.gmra.mrb[10].mxu0 %v707_v43  ;;  %v717_v47 = vadd.f32 %v2303_v44, %v3293_v23 }
 0x1b2   : > { %v712_v46 = vadd.f32 %v3293_v23, %v711_v45 }
 0x1b4   : > { %v2306_v48 = vpop.f32.mrb[12].mxu1  ;;  %2351 = vmatprep.mubr.f32.mxu0 %v712_v46 }
 0x1b5   : > { %v721_v49 = vpop.f32.mrb[13].mxu1  ;;  %2352 = vmatmul.mubr.f32.gmra.mrb[12].mxu0 %v717_v47  ;;  %v727_v51 = vadd.f32 %v2306_v48, %v3293_v23 }
 0x1b6   : > { %v722_v50 = vadd.f32 %v3293_v23, %v721_v49 }
 0x1b8   : > { %v2309_v52 = vpop.f32.mrb[14].mxu1  ;;  %2354 = vmatprep.mubr.f32.mxu0 %v722_v50 }
 0x1b9   : > { %v731_v53 = vpop.f32.mrb[15].mxu1  ;;  %2355 = vmatmul.mubr.f32.gmra.mrb[14].mxu0 %v727_v51  ;;  %v737_v55 = vadd.f32 %v2309_v52, %v3293_v23 }
 0x1ba   : > { %v732_v54 = vadd.f32 %v3293_v23, %v731_v53 }
 0x1bc   : > { %v2312_v56 = vpop.f32.mrb[16].mxu1  ;;  %2357 = vmatprep.mubr.f32.mxu0 %v732_v54 }
 0x1bd   : > { %v741_v57 = vpop.f32.mrb[17].mxu1  ;;  %2358 = vmatmul.mubr.f32.gmra.mrb[16].mxu0 %v737_v55  ;;  %v747_v59 = vadd.f32 %v2312_v56, %v3293_v23 }
 0x1be   : > { %v742_v58 = vadd.f32 %v3293_v23, %v741_v57 }
 0x1c0   : > { %2360 = vmatprep.mubr.f32.mxu0 %v742_v58  ;;  %v2315_v60 = vpop.f32.mrb[18].mxu1 }
 0x1c1   : > { %2361 = vmatmul.mubr.f32.gmra.mrb[18].mxu0 %v747_v59  ;;  %v757_v61 = vadd.f32 %v2315_v60, %v3293_v23  ;;  %v751_v62 = vpop.f32.mrb[19].mxu1 }
 0x1c2   : > { %v752_v63 = vadd.f32 %v3293_v23, %v751_v62 }
 0x1c4   : > { %2363 = vmatprep.mubr.f32.mxu0 %v752_v63  ;;  %v2318_v0 = vpop.f32.mrb[20].mxu1 }
 0x1c5   : > { %2364 = vmatmul.mubr.f32.gmra.mrb[20].mxu0 %v757_v61  ;;  %v767_v1 = vadd.f32 %v2318_v0, %v3293_v23  ;;  %v761_v2 = vpop.f32.mrb[21].mxu1 }
 0x1c6   : > { %v762_v3 = vadd.f32 %v3293_v23, %v761_v2 }
 0x1c8   : > { %2366 = vmatprep.mubr.f32.mxu0 %v762_v3  ;;  %v2321_v4 = vpop.f32.mrb[22].mxu1 }
 0x1c9   : > { %2367 = vmatmul.mubr.f32.gmra.mrb[22].mxu0 %v767_v1  ;;  %v777_v5 = vadd.f32 %v2321_v4, %v3293_v23  ;;  %v771_v6 = vpop.f32.mrb[23].mxu1 }
 0x1ca   : > { %v772_v7 = vadd.f32 %v3293_v23, %v771_v6 }
 0x1cc   : > { %2369 = vmatprep.mubr.f32.mxu0 %v772_v7  ;;  %v2324_v8 = vpop.f32.mrb[24].mxu1 }
 0x1cd   : > { %2370 = vmatmul.mubr.f32.gmra.mrb[24].mxu0 %v777_v5  ;;  %v787_v9 = vadd.f32 %v2324_v8, %v3293_v23  ;;  %v781_v10 = vpop.f32.mrb[25].mxu1 }
 0x1ce   : > { %v782_v11 = vadd.f32 %v3293_v23, %v781_v10 }
 0x1d0   : > { %2372 = vmatprep.mubr.f32.mxu0 %v782_v11  ;;  %v2327_v12 = vpop.f32.mrb[26].mxu1 }
 0x1d1   : > { %2373 = vmatmul.mubr.f32.gmra.mrb[26].mxu0 %v787_v9  ;;  %v797_v13 = vadd.f32 %v2327_v12, %v3293_v23  ;;  %v791_v14 = vpop.f32.mrb[27].mxu1 }
 0x1d2   : > { %v792_v15 = vadd.f32 %v3293_v23, %v791_v14 }
 0x1d4   : > { %2375 = vmatprep.mubr.f32.mxu0 %v792_v15  ;;  %v2330_v16 = vpop.f32.mrb[28].mxu1 }
 0x1d5   : > { %2376 = vmatmul.mubr.f32.gmra.mrb[28].mxu0 %v797_v13  ;;  %v807_v17 = vadd.f32 %v2330_v16, %v3293_v23  ;;  %v801_v18 = vpop.f32.mrb[29].mxu1 }
 0x1d6   : > { %v802_v19 = vadd.f32 %v3293_v23, %v801_v18 }
 0x1d8   : > { %2378 = vmatprep.mubr.f32.mxu0 %v802_v19  ;;  %v2333_v20 = vpop.f32.mrb[30].mxu1 }
 0x1d9   : > { %2379 = vmatmul.mubr.f32.gmra.mrb[30].mxu0 %v807_v17  ;;  %v817_v21 = vadd.f32 %v2333_v20, %v3293_v23  ;;  %v811_v22 = vpop.f32.mrb[31].mxu1 }
 0x1da   : > { %v812_v24 = vadd.f32 %v3293_v23, %v811_v22 }
 0x1dc   : > { %2381 = vmatprep.mubr.f32.mxu0 %v812_v24 }
 0x1dd   : > { %2382 = vmatmul.mubr.f32.gmra.mrb[32].mxu0 %v817_v21 }
 0x274   : > { %v2338_v33 = vpop.f32.mrb[2].mxu0 }
 0x275   : > { %v1047_v34 = vmul.f32 0.088388346, %v2338_v33  ;;  %v887_v23 = vpop.f32.mrb[3].mxu0 }
 0x276   : > { %v1046_v35 = vmul.f32 0.088388346, %v887_v23 }
 0x277   : > { %v1087_v36 = vmul.f32 %v3333_v32, %v1047_v34 }
 0x278   : > { %v1086_v37 = vmul.f32 %v3333_v32, %v1046_v35  ;;  %v2341_v38 = vpop.f32.mrb[4].mxu0 }
 0x279   : > { %v1049_v39 = vmul.f32 0.088388346, %v2341_v38  ;;  %v897_v40 = vpop.f32.mrb[5].mxu0  ;;  %v3340_v41 = vsel %vm1123_vm2, -1e+09, %v1087_v36 }
 0x27a   : > { %v1048_v42 = vmul.f32 0.088388346, %v897_v40  ;;  %v1160_v43 = vsel %vm1156_vm3, %v3340_v41, -inf  ;;  %v3346_v44 = vsel %vm1123_vm2, -1e+09, %v1086_v37 }
 0x27b   : > { %v1089_v45 = vmul.f32 %v3333_v32, %v1049_v39  ;;  %1161 = vmax.xlane.f32.xlu0 %v1160_v43  ;;  %v1157_v52 = vsel %vm1156_vm3, %v3346_v44, -inf }
 0x27c   : > { %v1088_v46 = vmul.f32 %v3333_v32, %v1048_v42  ;;  %v2344_v47 = vpop.f32.mrb[6].mxu0 }
 0x27d   : > { %v1051_v48 = vmul.f32 0.088388346, %v2344_v47  ;;  %v907_v49 = vpop.f32.mrb[7].mxu0  ;;  %v3352_v50 = vsel %vm1123_vm2, -1e+09, %v1089_v45 }
 0x27e   : > { %v1050_v51 = vmul.f32 0.088388346, %v907_v49  ;;  %v3358_v53 = vsel %vm1123_vm2, -1e+09, %v1088_v46  ;;  %v1166_v61 = vsel %vm1156_vm3, %v3352_v50, -inf }
 0x27f   : > { %v1091_v54 = vmul.f32 %v3333_v32, %v1051_v48  ;;  %1158 = vmax.xlane.f32.xlu0 %v1157_v52  ;;  %v1163_v6 = vsel %vm1156_vm3, %v3358_v53, -inf }
 0x280   : > { %v1090_v55 = vmul.f32 %v3333_v32, %v1050_v51  ;;  %v2347_v56 = vpop.f32.mrb[8].mxu0 }
 0x281   : > { %v1053_v57 = vmul.f32 0.088388346, %v2347_v56  ;;  %v917_v58 = vpop.f32.mrb[9].mxu0  ;;  %v3364_v59 = vsel %vm1123_vm2, -1e+09, %v1091_v54 }
 0x282   : > { %v1052_v60 = vmul.f32 0.088388346, %v917_v58  ;;  %v3370_v62 = vsel %vm1123_vm2, -1e+09, %v1090_v55 }
 0x283   : > { %v1093_v63 = vmul.f32 %v3333_v32, %v1053_v57  ;;  %1167 = vmax.xlane.f32.xlu0 %v1166_v61  ;;  %v1169_v15 = vsel %vm1156_vm3, %v3370_v62, -inf }
 0x284   : > { %v1092_v0 = vmul.f32 %v3333_v32, %v1052_v60  ;;  %v2350_v1 = vpop.f32.mrb[10].mxu0 }
 0x285   : > { %v1055_v2 = vmul.f32 0.088388346, %v2350_v1  ;;  %v927_v3 = vpop.f32.mrb[11].mxu0  ;;  %v3376_v4 = vsel %vm1123_vm2, -1e+09, %v1093_v63 }
 0x286   : > { %v1054_v5 = vmul.f32 0.088388346, %v927_v3  ;;  %v3382_v7 = vsel %vm1123_vm2, -1e+09, %v1092_v0 }
 0x287   : > { %v1095_v8 = vmul.f32 %v3333_v32, %v1055_v2  ;;  %1164 = vmax.xlane.f32.xlu0 %v1163_v6  ;;  %v1172_v2 = vsel %vm1156_vm3, %v3364_v59, -inf }
 0x288   : > { %v1094_v9 = vmul.f32 %v3333_v32, %v1054_v5  ;;  %v2353_v10 = vpop.f32.mrb[12].mxu0 }
 0x289   : > { %v1057_v11 = vmul.f32 0.088388346, %v2353_v10  ;;  %v937_v12 = vpop.f32.mrb[13].mxu0  ;;  %v3388_v13 = vsel %vm1123_vm2, -1e+09, %v1095_v8 }
 0x28a   : > { %v1056_v14 = vmul.f32 0.088388346, %v937_v12  ;;  %v3394_v16 = vsel %vm1123_vm2, -1e+09, %v1094_v9 }
 0x28b   : > { %v1097_v17 = vmul.f32 %v3333_v32, %v1057_v11  ;;  %1170 = vmax.xlane.f32.xlu0 %v1169_v15  ;;  %v1175_v15 = vsel %vm1156_vm3, %v3382_v7, -inf }
 0x28c   : > { %v1096_v18 = vmul.f32 %v3333_v32, %v1056_v14  ;;  %v2356_v19 = vpop.f32.mrb[14].mxu0 }
 0x28d   : > { %v1059_v20 = vmul.f32 0.088388346, %v2356_v19  ;;  %v947_v21 = vpop.f32.mrb[15].mxu0  ;;  %v3400_v22 = vsel %vm1123_vm2, -1e+09, %v1097_v17 }
 0x28e   : > { %v1058_v24 = vmul.f32 0.088388346, %v947_v21  ;;  %v3404_v25 = vsel %vm1123_vm2, -1e+09, %v1096_v18 }
 0x28f   : > { %v1099_v26 = vmul.f32 %v3333_v32, %v1059_v20 }
 0x290   : > { %v1098_v27 = vmul.f32 %v3333_v32, %v1058_v24  ;;  %v2359_v28 = vpop.f32.mrb[16].mxu0 }
 0x291   : > { %v1061_v29 = vmul.f32 0.088388346, %v2359_v28  ;;  %v957_v30 = vpop.f32.mrb[17].mxu0  ;;  %v3410_v33 = vsel %vm1123_vm2, -1e+09, %v1099_v26 }
 0x292   : > { %v1060_v34 = vmul.f32 0.088388346, %v957_v30  ;;  %v3414_v23 = vsel %vm1123_vm2, -1e+09, %v1098_v27 }
 0x293   : > { %v1101_v35 = vmul.f32 %v3333_v32, %v1061_v29  ;;  %v1178_v29 = vsel %vm1156_vm3, %v3376_v4, -inf }
 0x294   : > { %v1100_v36 = vmul.f32 %v3333_v32, %v1060_v34  ;;  %v2362_v37 = vpop.f32.mrb[18].mxu0 }
 0x295   : > { %v1063_v38 = vmul.f32 0.088388346, %v2362_v37  ;;  %v967_v39 = vpop.f32.mrb[19].mxu0  ;;  %v3420_v40 = vsel %vm1123_vm2, -1e+09, %v1101_v35 }
 0x296   : > { %v1062_v42 = vmul.f32 0.088388346, %v967_v39  ;;  %v1202_v43 = vsel %vm1156_vm3, %v3420_v40, -inf  ;;  %v3426_v45 = vsel %vm1123_vm2, -1e+09, %v1100_v36 }
 0x297   : > { %v1103_v46 = vmul.f32 %v3333_v32, %v1063_v38  ;;  %1203 = vmax.xlane.f32.xlu0 %v1202_v43  ;;  %v1199_v54 = vsel %vm1156_vm3, %v3426_v45, -inf }
 0x298   : > { %v1102_v47 = vmul.f32 %v3333_v32, %v1062_v42  ;;  %v2365_v48 = vpop.f32.mrb[20].mxu0 }
 0x299   : > { %v1065_v49 = vmul.f32 0.088388346, %v2365_v48  ;;  %v3432_v51 = vsel %vm1123_vm2, -1e+09, %v1103_v46  ;;  %v977_v52 = vpop.f32.mrb[21].mxu0  ;;  %v1181_v46 = vsel %vm1156_vm3, %v3394_v16, -inf }
 0x29a   : > { %v1208_v55 = vsel %vm1156_vm3, %v3432_v51, -inf  ;;  %v1064_v56 = vmul.f32 0.088388346, %v977_v52  ;;  %v3440_v57 = vsel %vm1123_vm2, -1e+09, %v1102_v47 }
 0x29b   : > { %v1105_v58 = vmul.f32 %v3333_v32, %v1065_v49  ;;  %1200 = vmax.xlane.f32.xlu0 %v1199_v54  ;;  %1209 = vmax.xlane.f32.xlu1 %v1208_v55  ;;  %v1205_v3 = vsel %vm1156_vm3, %v3440_v57, -inf }
 0x29c   : > { %v1104_v60 = vmul.f32 %v3333_v32, %v1064_v56  ;;  %v2368_v61 = vpop.f32.mrb[22].mxu0 }
 0x29d   : > { %v1067_v63 = vmul.f32 0.088388346, %v2368_v61  ;;  %v3446_v0 = vsel %vm1123_vm2, -1e+09, %v1105_v58  ;;  %v987_v1 = vpop.f32.mrb[23].mxu0  ;;  %v1184_v61 = vsel %vm1156_vm3, %v3388_v13, -inf }
 0x29e   : > { %v1066_v5 = vmul.f32 0.088388346, %v987_v1  ;;  %v3454_v6 = vsel %vm1123_vm2, -1e+09, %v1104_v60  ;;  %v1214_v17 = vsel %vm1156_vm3, %v3446_v0, -inf }
 0x29f   : > { %1173 = vmax.xlane.f32.xlu0 %v1172_v2  ;;  %1206 = vmax.xlane.f32.xlu1 %v1205_v3  ;;  %v1107_v8 = vmul.f32 %v3333_v32, %v1067_v63  ;;  %v1211_v30 = vsel %vm1156_vm3, %v3454_v6, -inf }
 0x2a0   : > { %v1106_v9 = vmul.f32 %v3333_v32, %v1066_v5  ;;  %v2371_v10 = vpop.f32.mrb[24].mxu0 }
 0x2a1   : > { %v1069_v11 = vmul.f32 0.088388346, %v2371_v10  ;;  %v3460_v12 = vsel %vm1123_vm2, -1e+09, %v1107_v8  ;;  %v997_v14 = vpop.f32.mrb[25].mxu0 }
 0x2a2   : > { %v1068_v18 = vmul.f32 0.088388346, %v997_v14  ;;  %v3468_v19 = vsel %vm1123_vm2, -1e+09, %v1106_v9  ;;  %v1220_v47 = vsel %vm1156_vm3, %v3460_v12, -inf  ;;  %v1187_v14 = vsel %vm1156_vm3, %v3404_v25, -inf }
 0x2a3   : > { %1176 = vmax.xlane.f32.xlu0 %v1175_v15  ;;  %1215 = vmax.xlane.f32.xlu1 %v1214_v17  ;;  %v1109_v20 = vmul.f32 %v3333_v32, %v1069_v11  ;;  %v1217_v63 = vsel %vm1156_vm3, %v3468_v19, -inf }
 0x2a4   : > { %v1108_v21 = vmul.f32 %v3333_v32, %v1068_v18  ;;  %v2374_v24 = vpop.f32.mrb[26].mxu0 }
 0x2a5   : > { %v1071_v26 = vmul.f32 0.088388346, %v2374_v24  ;;  %v3474_v27 = vsel %vm1123_vm2, -1e+09, %v1109_v20  ;;  %v1007_v28 = vpop.f32.mrb[27].mxu0 }
 0x2a6   : > { %v1070_v34 = vmul.f32 0.088388346, %v1007_v28  ;;  %v3482_v35 = vsel %vm1123_vm2, -1e+09, %v1108_v21  ;;  %v1226_v15 = vsel %vm1156_vm3, %v3474_v27, -inf }
 0x2a7   : > { %1179 = vmax.xlane.f32.xlu0 %v1178_v29  ;;  %1212 = vmax.xlane.f32.xlu1 %v1211_v30  ;;  %v1111_v36 = vmul.f32 %v3333_v32, %v1071_v26  ;;  %v1190_v26 = vsel %vm1156_vm3, %v3400_v22, -inf  ;;  %v1223_v28 = vsel %vm1156_vm3, %v3482_v35, -inf  ;;  %v1193_v30 = vsel %vm1156_vm3, %v3414_v23, -inf }
 0x2a8   : > { %v1110_v37 = vmul.f32 %v3333_v32, %v1070_v34  ;;  %v2377_v38 = vpop.f32.mrb[28].mxu0  ;;  %v1196_v34 = vsel %vm1156_vm3, %v3410_v33, -inf }
 0x2a9   : > { %v1073_v39 = vmul.f32 0.088388346, %v2377_v38  ;;  %v3488_v42 = vsel %vm1123_vm2, -1e+09, %v1111_v36  ;;  %v1017_v43 = vpop.f32.mrb[29].mxu0 }
 0x2aa   : > { %v1072_v48 = vmul.f32 0.088388346, %v1017_v43  ;;  %v3496_v49 = vsel %vm1123_vm2, -1e+09, %v1110_v37 }
 0x2ab   : > { %1182 = vmax.xlane.f32.xlu0 %v1181_v46  ;;  %1221 = vmax.xlane.f32.xlu1 %v1220_v47  ;;  %v1113_v52 = vmul.f32 %v3333_v32, %v1073_v39  ;;  %v1229_v36 = vsel %vm1156_vm3, %v3496_v49, -inf }
 0x2ac   : > { %v1112_v54 = vmul.f32 %v3333_v32, %v1072_v48  ;;  %v2380_v55 = vpop.f32.mrb[30].mxu0 }
 0x2ad   : > { %v1075_v56 = vmul.f32 0.088388346, %v2380_v55  ;;  %v3502_v58 = vsel %vm1123_vm2, -1e+09, %v1113_v52  ;;  %v1027_v60 = vpop.f32.mrb[31].mxu0 }
 0x2ae   : > { %v1074_v1 = vmul.f32 0.088388346, %v1027_v60  ;;  %v3510_v2 = vsel %vm1123_vm2, -1e+09, %v1112_v54  ;;  %v1238_v31 = vsel %vm1156_vm3, %v3502_v58, -inf }
 0x2af   : > { %1185 = vmax.xlane.f32.xlu0 %v1184_v61  ;;  %1218 = vmax.xlane.f32.xlu1 %v1217_v63  ;;  %v1115_v3 = vmul.f32 %v3333_v32, %v1075_v56  ;;  %v1235_v37 = vsel %vm1156_vm3, %v3510_v2, -inf }
 0x2b0   : > { %v1114_v5 = vmul.f32 %v3333_v32, %v1074_v1  ;;  %v2383_v8 = vpop.f32.mrb[32].mxu0 }
 0x2b1   : > { %v1077_v9 = vmul.f32 0.088388346, %v2383_v8  ;;  %v1037_v10 = vpop.f32.mrb[33].mxu0  ;;  %v3516_v11 = vsel %vm1123_vm2, -1e+09, %v1115_v3 }
 0x2b2   : > { %v1076_v17 = vmul.f32 0.088388346, %v1037_v10  ;;  %v3524_v18 = vsel %vm1123_vm2, -1e+09, %v1114_v5  ;;  %v1244_v38 = vsel %vm1156_vm3, %v3516_v11, -inf }
 0x2b3   : > { %1188 = vmax.xlane.f32.xlu0 %v1187_v14  ;;  %1227 = vmax.xlane.f32.xlu1 %v1226_v15  ;;  %v1117_v20 = vmul.f32 %v3333_v32, %v1077_v9  ;;  %v1241_v39 = vsel %vm1156_vm3, %v3524_v18, -inf }
 0x2b4   : > { %v1116_v21 = vmul.f32 %v3333_v32, %v1076_v17  ;;  %v1232_v32 = vsel %vm1156_vm3, %v3488_v42, -inf }
 0x2b5   : > { %v3530_v24 = vsel %vm1123_vm2, -1e+09, %v1117_v20 }
 0x2b6   : > { %v3538_v29 = vsel %vm1123_vm2, -1e+09, %v1116_v21  ;;  %v1250_v46 = vsel %vm1156_vm3, %v3530_v24, -inf }
 0x2b7   : > { %1191 = vmax.xlane.f32.xlu0 %v1190_v26  ;;  %1224 = vmax.xlane.f32.xlu1 %v1223_v28  ;;  %v1247_v43 = vsel %vm1156_vm3, %v3538_v29, -inf }
 0x2bb   : > { %1194 = vmax.xlane.f32.xlu0 %v1193_v30  ;;  %1233 = vmax.xlane.f32.xlu1 %v1232_v32 }
 0x2bf   : > { %1197 = vmax.xlane.f32.xlu0 %v1196_v34  ;;  %1230 = vmax.xlane.f32.xlu1 %v1229_v36 }
 0x2c3   : > { %1239 = vmax.xlane.f32.xlu1 %v1238_v31 }
 0x2c7   : > { %1236 = vmax.xlane.f32.xlu1 %v1235_v37 }
 0x2cb   : > { %1245 = vmax.xlane.f32.xlu1 %v1244_v38 }
 0x2cf   : > { %1242 = vmax.xlane.f32.xlu1 %v1241_v39 }
 0x2d3   : > { %1248 = vmax.xlane.f32.xlu1 %v1247_v43 }
 0x2d7   : > { %1251 = vmax.xlane.f32.xlu1 %v1250_v46 }
 0x308   : > { %v1162_v47 = vpop.xlane.xlu0 %1161 }
 0x309   : > { %v1254_v48 = vsub.f32 %v3340_v41, %v1162_v47 }
 0x30b   : > { %v1287_v52 = vmul.f32 1.442695, %v1254_v48  ;;  %v1509_v48 = vld [vmem:[%s3225_s12] sm:$0xff]  ;;  %s1864_s12 = scalar_lea.sflag [#allocation5], %s3211_s29 }
 0x30c   : > { %v1159_v54 = vpop.xlane.xlu0 %1158  ;;  %2490 = vmatprep.subr.mxu1 %v1509_v48  ;;  %2384 = vmatprep.subr.mxu0 %v1509_v48 }
 0x30d   : > { %2588 = vpow2.f32 %v1287_v52  ;;  %v1253_v55 = vsub.f32 %v3346_v44, %v1159_v54  ;;  %2491 = vmatpush3.msra.mxu1 %v1509_v48  ;;  %2385 = vmatpush3.msra.mxu0 %v1509_v48 }
 0x30f   : > { %v1285_v56 = vmul.f32 1.442695, %v1253_v55 }
 0x310   : > { %v1168_v60 = vpop.xlane.xlu0 %1167 }
 0x311   : > { %2590 = vpow2.f32 %v1285_v56  ;;  %v1256_v61 = vsub.f32 %v3352_v50, %v1168_v60 }
 0x313   : > { %v1291_v63 = vmul.f32 1.442695, %v1256_v61 }
 0x314   : > { %v1165_v1 = vpop.xlane.xlu0 %1164 }
 0x315   : > { %2592 = vpow2.f32 %v1291_v63  ;;  %v1255_v3 = vsub.f32 %v3358_v53, %v1165_v1 }
 0x317   : > { %v3564_v5 = vpop.eup %2588  ;;  %v1289_v8 = vmul.f32 1.442695, %v1255_v3 }
 0x318   : > { %v1352_v41 = vsel %vm1156_vm3, %v3564_v5, 0.0  ;;  %v1171_v10 = vpop.xlane.xlu0 %1170 }
 0x319   : > { %2594 = vpow2.f32 %v1289_v8  ;;  %1353 = vadd.xlane.f32.xlu0 %v1352_v41  ;;  %v1257_v32 = vsub.f32 %v3370_v62, %v1171_v10 }
 0x31b   : > { %v3568_v9 = vpop.eup %2590  ;;  %v1293_v38 = vmul.f32 1.442695, %v1257_v32 }
 0x31c   : > { %v1349_v44 = vsel %vm1156_vm3, %v3568_v9, 0.0 }
 0x31d   : > { %1350 = vadd.xlane.f32.xlu0 %v1349_v44 }
 0x31f   : > { %v3572_v50 = vpop.eup %2592 }
 0x320   : > { %v1358_v53 = vsel %vm1156_vm3, %v3572_v50, 0.0 }
 0x321   : > { %1359 = vadd.xlane.f32.xlu0 %v1358_v53 }
 0x323   : > { %v3576_v14 = vpop.eup %2594 }
 0x324   : > { %v1204_v15 = vpop.xlane.xlu0 %1203  ;;  %v1355_v17 = vsel %vm1156_vm3, %v3576_v14, 0.0 }
 0x325   : > { %v1268_v20 = vsub.f32 %v3420_v40, %v1204_v15  ;;  %1356 = vadd.xlane.f32.xlu0 %v1355_v17 }
 0x327   : > { %v1315_v21 = vmul.f32 1.442695, %v1268_v20 }
 0x328   : > { %v1201_v26 = vpop.xlane.xlu0 %1200  ;;  %v1210_v28 = vpop.xlane.xlu1 %1209 }
 0x329   : > { %2596 = vpow2.f32 %v1315_v21  ;;  %v1270_v30 = vsub.f32 %v3432_v51, %v1210_v28  ;;  %v1267_v39 = vsub.f32 %v3426_v45, %v1201_v26 }
 0x32b   : > { %v1319_v34 = vmul.f32 1.442695, %v1270_v30  ;;  %v1313_v62 = vmul.f32 1.442695, %v1267_v39 }
 0x32c   : > { %v1174_v36 = vpop.xlane.xlu0 %1173  ;;  %v1207_v31 = vpop.xlane.xlu1 %1206 }
 0x32d   : > { %v1258_v37 = vsub.f32 %v3364_v59, %v1174_v36  ;;  %2598 = vpow2.f32 %v1319_v34  ;;  %v1269_v51 = vsub.f32 %v3440_v57, %v1207_v31 }
 0x32f   : > { %v1295_v40 = vmul.f32 1.442695, %v1258_v37 }
 0x330   : > { %v1177_v43 = vpop.xlane.xlu0 %1176  ;;  %v1216_v46 = vpop.xlane.xlu1 %1215 }
 0x331   : > { %2600 = vpow2.f32 %v1295_v40  ;;  %v1272_v47 = vsub.f32 %v3446_v0, %v1216_v46  ;;  %v1317_v0 = vmul.f32 1.442695, %v1269_v51  ;;  %v1259_v60 = vsub.f32 %v3382_v7, %v1177_v43 }
 0x332   : > { %2602 = vpow2.f32 %v1293_v38 }
 0x333   : > { %v3587_v52 = vpop.eup %2596  ;;  %v1323_v54 = vmul.f32 1.442695, %v1272_v47 }
 0x334   : > { %v1180_v59 = vpop.xlane.xlu0 %1179  ;;  %v1213_v55 = vpop.xlane.xlu1 %1212  ;;  %v1394_v45 = vsel %vm1156_vm3, %v3587_v52, 0.0 }
 0x335   : > { %v1271_v56 = vsub.f32 %v3454_v6, %v1213_v55  ;;  %1395 = vadd.xlane.f32.xlu1 %v1394_v45  ;;  %2604 = vpow2.f32 %v1323_v54  ;;  %v1297_v6 = vmul.f32 1.442695, %v1259_v60  ;;  %v1260_v44 = vsub.f32 %v3376_v4, %v1180_v59 }
 0x336   : > { %2606 = vpow2.f32 %v1313_v62 }
 0x337   : > { %v1321_v61 = vmul.f32 1.442695, %v1271_v56  ;;  %v3594_v57 = vpop.eup %2598  ;;  %v1299_v20 = vmul.f32 1.442695, %v1260_v44 }
 0x338   : > { %v1183_v63 = vpop.xlane.xlu0 %1182  ;;  %v1222_v1 = vpop.xlane.xlu1 %1221  ;;  %v1400_v8 = vsel %vm1156_vm3, %v3594_v57, 0.0 }
 0x339   : > { %v1274_v3 = vsub.f32 %v3460_v12, %v1222_v1  ;;  %2608 = vpow2.f32 %v1321_v61  ;;  %1401 = vadd.xlane.f32.xlu1 %v1400_v8  ;;  %v1261_v21 = vsub.f32 %v3394_v16, %v1183_v63 }
 0x33a   : > { %2610 = vpow2.f32 %v1317_v0 }
 0x33b   : > { %v3599_v41 = vpop.eup %2600  ;;  %v1327_v10 = vmul.f32 1.442695, %v1274_v3  ;;  %v1301_v16 = vmul.f32 1.442695, %v1261_v21 }
 0x33c   : > { %v1186_v7 = vpop.xlane.xlu0 %1185  ;;  %v1219_v53 = vpop.xlane.xlu1 %1218  ;;  %v1364_v15 = vsel %vm1156_vm3, %v3599_v41, 0.0 }
 0x33d   : > { %v3604_v17 = vpop.eup %2602  ;;  %v1273_v12 = vsub.f32 %v3468_v19, %v1219_v53  ;;  %1365 = vadd.xlane.f32.xlu0 %v1364_v15  ;;  %2612 = vpow2.f32 %v1327_v10  ;;  %v1262_v31 = vsub.f32 %v3388_v13, %v1186_v7 }
 0x33e   : > { %2614 = vpow2.f32 %v1297_v6  ;;  %v1361_v32 = vsel %vm1156_vm3, %v3604_v17, 0.0 }
 0x33f   : > { %v1325_v26 = vmul.f32 1.442695, %v1273_v12  ;;  %v3608_v28 = vpop.eup %2604  ;;  %v1303_v13 = vmul.f32 1.442695, %v1262_v31 }
 0x340   : > { %v1189_v4 = vpop.xlane.xlu0 %1188  ;;  %v1228_v30 = vpop.xlane.xlu1 %1227  ;;  %v1406_v19 = vsel %vm1156_vm3, %v3608_v28, 0.0 }
 0x341   : > { %v3612_v34 = vpop.eup %2606  ;;  %v1276_v36 = vsub.f32 %v3474_v27, %v1228_v30  ;;  %1362 = vadd.xlane.f32.xlu0 %v1361_v32  ;;  %2616 = vpow2.f32 %v1325_v26  ;;  %1407 = vadd.xlane.f32.xlu1 %v1406_v19  ;;  %v1263_v48 = vsub.f32 %v3404_v25, %v1189_v4 }
 0x342   : > { %2618 = vpow2.f32 %v1299_v20  ;;  %v1391_v43 = vsel %vm1156_vm3, %v3612_v34, 0.0 }
 0x343   : > { %v1331_v37 = vmul.f32 1.442695, %v1276_v36  ;;  %v3618_v38 = vpop.eup %2608  ;;  %v1305_v25 = vmul.f32 1.442695, %v1263_v48 }
 0x344   : > { %v1192_v39 = vpop.xlane.xlu0 %1191  ;;  %v1225_v40 = vpop.xlane.xlu1 %1224  ;;  %v1403_v47 = vsel %vm1156_vm3, %v3618_v38, 0.0 }
 0x345   : > { %v3622_v46 = vpop.eup %2610  ;;  %v1275_v27 = vsub.f32 %v3482_v35, %v1225_v40  ;;  %1392 = vadd.xlane.f32.xlu0 %v1391_v43  ;;  %2620 = vpow2.f32 %v1331_v37  ;;  %1404 = vadd.xlane.f32.xlu1 %v1403_v47  ;;  %v1264_v0 = vsub.f32 %v3400_v22, %v1192_v39 }
 0x346   : > { %2622 = vpow2.f32 %v1301_v16  ;;  %v1397_v59 = vsel %vm1156_vm3, %v3622_v46, 0.0 }
 0x347   : > { %v1329_v62 = vmul.f32 1.442695, %v1275_v27  ;;  %v3628_v51 = vpop.eup %2612  ;;  %v1307_v6 = vmul.f32 1.442695, %v1264_v0 }
 0x348   : > { %v1234_v54 = vpop.xlane.xlu1 %1233  ;;  %v3632_v55 = vpop.eup %2614  ;;  %v1412_v45 = vsel %vm1156_vm3, %v3628_v51, 0.0 }
 0x349   : > { %v1278_v35 = vsub.f32 %v3488_v42, %v1234_v54  ;;  %1398 = vadd.xlane.f32.xlu0 %v1397_v59  ;;  %2624 = vpow2.f32 %v1329_v62  ;;  %v1195_v56 = vpop.xlane.xlu0 %1194  ;;  %1413 = vadd.xlane.f32.xlu1 %v1412_v45  ;;  %v1367_v1 = vsel %vm1156_vm3, %v3632_v55, 0.0 }
 0x34a   : > { %2626 = vpow2.f32 %v1303_v13  ;;  %v1265_v22 = vsub.f32 %v3414_v23, %v1195_v56 }
 0x34b   : > { %v1335_v60 = vmul.f32 1.442695, %v1278_v35  ;;  %v3638_v61 = vpop.eup %2616 }
 0x34c   : > { %v1231_v63 = vpop.xlane.xlu1 %1230  ;;  %v3642_v3 = vpop.eup %2618  ;;  %v1409_v8 = vsel %vm1156_vm3, %v3638_v61, 0.0  ;;  %v1309_v23 = vmul.f32 1.442695, %v1265_v22 }
 0x34d   : > { %v1277_v42 = vsub.f32 %v3496_v49, %v1231_v63  ;;  %1368 = vadd.xlane.f32.xlu0 %v1367_v1  ;;  %2628 = vpow2.f32 %v1335_v60  ;;  %1410 = vadd.xlane.f32.xlu1 %v1409_v8  ;;  %v1198_v7 = vpop.xlane.xlu0 %1197  ;;  %v1370_v15 = vsel %vm1156_vm3, %v3642_v3, 0.0 }
 0x34e   : > { %2630 = vpow2.f32 %v1305_v25  ;;  %v1266_v21 = vsub.f32 %v3410_v33, %v1198_v7 }
 0x34f   : > { %v1333_v44 = vmul.f32 1.442695, %v1277_v42  ;;  %v3648_v10 = vpop.eup %2620 }
 0x350   : > { %v1240_v53 = vpop.xlane.xlu1 %1239  ;;  %v3652_v12 = vpop.eup %2622  ;;  %v1418_v20 = vsel %vm1156_vm3, %v3648_v10, 0.0  ;;  %v1311_v16 = vmul.f32 1.442695, %v1266_v21 }
 0x351   : > { %v1280_v49 = vsub.f32 %v3502_v58, %v1240_v53  ;;  %1371 = vadd.xlane.f32.xlu0 %v1370_v15  ;;  %2632 = vpow2.f32 %v1333_v44  ;;  %1419 = vadd.xlane.f32.xlu1 %v1418_v20  ;;  %v1373_v32 = vsel %vm1156_vm3, %v3652_v12, 0.0 }
 0x352   : > { %2634 = vpow2.f32 %v1307_v6 }
 0x353   : > { %v1339_v26 = vmul.f32 1.442695, %v1280_v49  ;;  %v3658_v4 = vpop.eup %2624 }
 0x354   : > { %v1237_v30 = vpop.xlane.xlu1 %1236  ;;  %v3662_v36 = vpop.eup %2626  ;;  %v1415_v19 = vsel %vm1156_vm3, %v3658_v4, 0.0 }
 0x355   : > { %2636 = vpow2.f32 %v1339_v26  ;;  %v1279_v58 = vsub.f32 %v3510_v2, %v1237_v30  ;;  %1374 = vadd.xlane.f32.xlu0 %v1373_v32  ;;  %1416 = vadd.xlane.f32.xlu1 %v1415_v19  ;;  %v1376_v39 = vsel %vm1156_vm3, %v3662_v36, 0.0 }
 0x356   : > { %2638 = vpow2.f32 %v1309_v23 }
 0x357   : > { %v1337_v33 = vmul.f32 1.442695, %v1279_v58  ;;  %v3667_v31 = vpop.eup %2628 }
 0x358   : > { %v1246_v37 = vpop.xlane.xlu1 %1245  ;;  %v3671_v40 = vpop.eup %2630  ;;  %v1424_v2 = vsel %vm1156_vm3, %v3667_v31, 0.0 }
 0x359   : > { %2640 = vpow2.f32 %v1337_v33  ;;  %v1282_v43 = vsub.f32 %v3516_v11, %v1246_v37  ;;  %1377 = vadd.xlane.f32.xlu0 %v1376_v39  ;;  %1425 = vadd.xlane.f32.xlu1 %v1424_v2  ;;  %v1379_v48 = vsel %vm1156_vm3, %v3671_v40, 0.0 }
 0x35a   : > { %2642 = vpow2.f32 %v1311_v16 }
 0x35b   : > { %v1343_v27 = vmul.f32 1.442695, %v1282_v43  ;;  %v3676_v47 = vpop.eup %2632 }
 0x35c   : > { %v1243_v13 = vpop.xlane.xlu1 %1242  ;;  %v3680_v62 = vpop.eup %2634  ;;  %v1421_v11 = vsel %vm1156_vm3, %v3676_v47, 0.0 }
 0x35d   : > { %2644 = vpow2.f32 %v1343_v27  ;;  %v1281_v54 = vsub.f32 %v3524_v18, %v1243_v13  ;;  %1380 = vadd.xlane.f32.xlu0 %v1379_v48  ;;  %1422 = vadd.xlane.f32.xlu1 %v1421_v11  ;;  %v1382_v56 = vsel %vm1156_vm3, %v3680_v62, 0.0 }
 0x35f   : > { %v3685_v59 = vpop.eup %2636  ;;  %v1341_v35 = vmul.f32 1.442695, %v1281_v54 }
 0x360   : > { %v1249_v45 = vpop.xlane.xlu1 %1248  ;;  %v1430_v25 = vsel %vm1156_vm3, %v3685_v59, 0.0  ;;  %v3691_v0 = vpop.eup %2638 }
 0x361   : > { %2646 = vpow2.f32 %v1341_v35  ;;  %v1283_v18 = vsub.f32 %v3538_v29, %v1249_v45  ;;  %1383 = vadd.xlane.f32.xlu0 %v1382_v56  ;;  %1431 = vadd.xlane.f32.xlu1 %v1430_v25  ;;  %v1385_v42 = vsel %vm1156_vm3, %v3691_v0, 0.0 }
 0x363   : > { %v3694_v60 = vpop.eup %2640  ;;  %v1345_v63 = vmul.f32 1.442695, %v1283_v18 }
 0x364   : > { %v1252_v1 = vpop.xlane.xlu1 %1251  ;;  %v1427_v8 = vsel %vm1156_vm3, %v3694_v60, 0.0  ;;  %v3700_v6 = vpop.eup %2642 }
 0x365   : > { %2648 = vpow2.f32 %v1345_v63  ;;  %v1284_v22 = vsub.f32 %v3530_v24, %v1252_v1  ;;  %1386 = vadd.xlane.f32.xlu0 %v1385_v42  ;;  %1428 = vadd.xlane.f32.xlu1 %v1427_v8  ;;  %v1388_v7 = vsel %vm1156_vm3, %v3700_v6, 0.0 }
 0x367   : > { %v3703_v29 = vpop.eup %2644  ;;  %v1347_v44 = vmul.f32 1.442695, %v1284_v22 }
 0x368   : > { %v1436_v53 = vsel %vm1156_vm3, %v3703_v29, 0.0 }
 0x369   : > { %2650 = vpow2.f32 %v1347_v44  ;;  %1389 = vadd.xlane.f32.xlu0 %v1388_v7  ;;  %1437 = vadd.xlane.f32.xlu1 %v1436_v53 }
 0x36b   : > { %v3709_v15 = vpop.eup %2646 }
 0x36c   : > { %v1433_v49 = vsel %vm1156_vm3, %v3709_v15, 0.0 }
 0x36d   : > { %1434 = vadd.xlane.f32.xlu1 %v1433_v49 }
 0x36f   : > { %v3713_v24 = vpop.eup %2648 }
 0x370   : > { %v1439_v20 = vsel %vm1156_vm3, %v3713_v24, 0.0 }
 0x371   : > { %1440 = vadd.xlane.f32.xlu1 %v1439_v20 }
 0x373   : > { %v3717_v23 = vpop.eup %2650 }
 0x374   : > { %v1442_v21 = vsel %vm1156_vm3, %v3717_v23, 0.0 }
 0x375   : > { %1443 = vadd.xlane.f32.xlu1 %v1442_v21 }
 0x3a6   : > { %v1354_v26 = vpop.xlane.xlu0 %1353 }
 0x3a7   : > { %2652 = vrcp.f32 %v1354_v26 }
 0x3aa   : > { %v1351_v30 = vpop.xlane.xlu0 %1350 }
 0x3ab   : > { %2654 = vrcp.f32 %v1351_v30 }
 0x3ae   : > { %v1360_v32 = vpop.xlane.xlu0 %1359 }
 0x3af   : > { %2656 = vrcp.f32 %v1360_v32 }
 0x3b1   : > { %v2653_v19 = vpop.eup %2652 }
 0x3b2   : > { %v1357_v58 = vpop.xlane.xlu0 %1356  ;;  %v1478_v37 = vmul.f32 %v2653_v19, %v3564_v5 }
 0x3b3   : > { %2658 = vrcp.f32 %v1357_v58 }
 0x3b5   : > { %v2655_v16 = vpop.eup %2654 }
 0x3b6   : > { %v1477_v33 = vmul.f32 %v2655_v16, %v3568_v9 }
 0x3b8   : > { %2386 = vmatprep.mubr.msk.f32.mxu0 %vm1156_vm3, %v1477_v33 }
 0x3b9   : > { %2387 = vmatmul.mubr.msk.f32.vlgmr.msra.gmra.mrb[34].mxu0 %vm1156_vm3, %v1478_v37  ;;  %v2657_v39 = vpop.eup %2656 }
 0x3ba   : > { %v1480_v27 = vmul.f32 %v2657_v39, %v3572_v50 }
 0x3bd   : > { %v2659_v43 = vpop.eup %2658 }
 0x3be   : > { %v1479_v2 = vmul.f32 %v2659_v43, %v3576_v14 }
 0x3c0   : > { %2389 = vmatprep.mubr.msk.f32.mxu0 %vm1156_vm3, %v1479_v2 }
 0x3c1   : > { %2390 = vmatmul.mubr.msk.f32.gmra.mrb[36].mxu0 %vm1156_vm3, %v1480_v27 }
 0x3c2   : > { %v1396_v13 = vpop.xlane.xlu1 %1395 }
 0x3c6   : > { %v1402_v54 = vpop.xlane.xlu1 %1401 }
 0x3ca   : > { %v1366_v48 = vpop.xlane.xlu0 %1365 }
 0x3cb   : > { %2660 = vrcp.f32 %v1366_v48 }
 0x3ce   : > { %v1363_v9 = vpop.xlane.xlu0 %1362  ;;  %v1408_v5 = vpop.xlane.xlu1 %1407 }
 0x3cf   : > { %2662 = vrcp.f32 %v1363_v9 }
 0x3d0   : > { %2664 = vrcp.f32 %v1396_v13 }
 0x3d2   : > { %v1393_v11 = vpop.xlane.xlu0 %1392  ;;  %v1405_v35 = vpop.xlane.xlu1 %1404 }
 0x3d3   : > { %2666 = vrcp.f32 %v1393_v11 }
 0x3d4   : > { %2668 = vrcp.f32 %v1402_v54 }
 0x3d5   : > { %2670 = vrcp.f32 %v1405_v35  ;;  %v2661_v45 = vpop.eup %2660 }
 0x3d6   : > { %v1399_v14 = vpop.xlane.xlu0 %1398  ;;  %v1414_v50 = vpop.xlane.xlu1 %1413  ;;  %v1482_v1 = vmul.f32 %v2661_v45, %v3599_v41 }
 0x3d7   : > { %2672 = vrcp.f32 %v1399_v14 }
 0x3d8   : > { %2674 = vrcp.f32 %v1408_v5 }
 0x3d9   : > { %v2663_v56 = vpop.eup %2662 }
 0x3da   : > { %v1369_v25 = vpop.xlane.xlu0 %1368  ;;  %v1481_v18 = vmul.f32 %v2663_v56, %v3604_v17  ;;  %v1411_v63 = vpop.xlane.xlu1 %1410 }
 0x3db   : > { %2676 = vrcp.f32 %v1369_v25  ;;  %v2665_v42 = vpop.eup %2664 }
 0x3dc   : > { %2678 = vrcp.f32 %v1411_v63  ;;  %2392 = vmatprep.mubr.msk.f32.mxu0 %vm1156_vm3, %v1481_v18  ;;  %v1492_v53 = vmul.f32 %v2665_v42, %v3587_v52 }
 0x3dd   : > { %v2667_v8 = vpop.eup %2666  ;;  %2393 = vmatmul.mubr.msk.f32.gmra.mrb[38].mxu0 %vm1156_vm3, %v1482_v1  ;;  %2680 = vrcp.f32 %v1414_v50 }
 0x3de   : > { %v1372_v22 = vpop.xlane.xlu0 %1371  ;;  %v1491_v44 = vmul.f32 %v2667_v8, %v3612_v34  ;;  %v2669_v7 = vpop.eup %2668 }
 0x3df   : > { %2682 = vrcp.f32 %v1372_v22  ;;  %v1420_v17 = vpop.xlane.xlu1 %1419  ;;  %v2671_v49 = vpop.eup %2670  ;;  %v1494_v30 = vmul.f32 %v2669_v7, %v3594_v57 }
 0x3e0   : > { %2407 = vmatprep.mubr.msk.f32.mxu1 %vm1156_vm3, %v1491_v44  ;;  %2684 = vrcp.f32 %v1420_v17  ;;  %v1495_v52 = vmul.f32 %v2671_v49, %v3618_v38 }
 0x3e1   : > { %v2673_v41 = vpop.eup %2672  ;;  %2408 = vmatmul.mubr.msk.f32.vlgmr.msra.gmra.mrb[32].mxu1 %vm1156_vm3, %v1492_v53 }
 0x3e2   : > { %v1375_v20 = vpop.xlane.xlu0 %1374  ;;  %v1493_v21 = vmul.f32 %v2673_v41, %v3622_v46  ;;  %v2675_v34 = vpop.eup %2674 }
 0x3e3   : > { %2686 = vrcp.f32 %v1375_v20  ;;  %v1417_v26 = vpop.xlane.xlu1 %1416  ;;  %v1496_v33 = vmul.f32 %v2675_v34, %v3608_v28 }
 0x3e4   : > { %2688 = vrcp.f32 %v1417_v26  ;;  %2410 = vmatprep.mubr.msk.f32.mxu1 %vm1156_vm3, %v1493_v21 }
 0x3e5   : > { %v2677_v32 = vpop.eup %2676  ;;  %2411 = vmatmul.mubr.msk.f32.gmra.mrb[34].mxu1 %vm1156_vm3, %v1494_v30 }
 0x3e6   : > { %v2679_v58 = vpop.eup %2678  ;;  %v1378_v19 = vpop.xlane.xlu0 %1377  ;;  %2413 = vmatprep.mubr.msk.f32.mxu1 %vm1156_vm3, %v1495_v52  ;;  %v1483_v16 = vmul.f32 %v2677_v32, %v3632_v55 }
 0x3e7   : > { %2690 = vrcp.f32 %v1378_v19  ;;  %v1426_v46 = vpop.xlane.xlu1 %1425  ;;  %v2681_v57 = vpop.eup %2680  ;;  %v1497_v37 = vmul.f32 %v2679_v58, %v3638_v61 }
 0x3e8   : > { %2395 = vmatprep.mubr.msk.f32.mxu0 %vm1156_vm3, %v1483_v16  ;;  %2692 = vrcp.f32 %v1426_v46  ;;  %v1498_v2 = vmul.f32 %v2681_v57, %v3628_v51 }
 0x3e9   : > { %v2683_v39 = vpop.eup %2682  ;;  %2414 = vmatmul.mubr.msk.f32.gmra.mrb[36].mxu1 %vm1156_vm3, %v1496_v33 }
 0x3ea   : > { %v1381_v38 = vpop.xlane.xlu0 %1380  ;;  %2416 = vmatprep.mubr.msk.f32.mxu1 %vm1156_vm3, %v1497_v37  ;;  %v1484_v43 = vmul.f32 %v2683_v39, %v3642_v3  ;;  %v2685_v27 = vpop.eup %2684 }
 0x3eb   : > { %2694 = vrcp.f32 %v1381_v38  ;;  %v1423_v55 = vpop.xlane.xlu1 %1422  ;;  %v1500_v3 = vmul.f32 %v2685_v27, %v3648_v10 }
 0x3ec   : > { %2696 = vrcp.f32 %v1423_v55  ;;  %2396 = vmatmul.mubr.msk.f32.gmra.mrb[40].mxu0 %vm1156_vm3, %v1484_v43 }
 0x3ed   : > { %v2687_v28 = vpop.eup %2686  ;;  %2417 = vmatmul.mubr.msk.f32.gmra.mrb[38].mxu1 %vm1156_vm3, %v1498_v2 }
 0x3ee   : > { %v2689_v61 = vpop.eup %2688  ;;  %v1384_v13 = vpop.xlane.xlu0 %1383  ;;  %v1485_v48 = vmul.f32 %v2687_v28, %v3652_v12 }
 0x3ef   : > { %2698 = vrcp.f32 %v1384_v13  ;;  %v1432_v54 = vpop.xlane.xlu1 %1431  ;;  %v1499_v9 = vmul.f32 %v2689_v61, %v3658_v4 }
 0x3f0   : > { %2398 = vmatprep.mubr.msk.f32.mxu0 %vm1156_vm3, %v1485_v48  ;;  %2700 = vrcp.f32 %v1432_v54 }
 0x3f1   : > { %v2691_v51 = vpop.eup %2690  ;;  %2419 = vmatprep.mubr.msk.f32.mxu1 %vm1156_vm3, %v1499_v9 }
 0x3f2   : > { %2420 = vmatmul.mubr.msk.f32.gmra.mrb[40].mxu1 %vm1156_vm3, %v1500_v3  ;;  %v1387_v5 = vpop.xlane.xlu0 %1386  ;;  %v1486_v11 = vmul.f32 %v2691_v51, %v3662_v36  ;;  %v2693_v12 = vpop.eup %2692 }
 0x3f3   : > { %2702 = vrcp.f32 %v1387_v5  ;;  %v1429_v35 = vpop.xlane.xlu1 %1428  ;;  %v1502_v25 = vmul.f32 %v2693_v12, %v3667_v31 }
 0x3f4   : > { %2704 = vrcp.f32 %v1429_v35  ;;  %2399 = vmatmul.mubr.msk.f32.gmra.mrb[42].mxu0 %vm1156_vm3, %v1486_v11 }
 0x3f5   : > { %v2695_v4 = vpop.eup %2694 }
 0x3f6   : > { %v2697_v14 = vpop.eup %2696  ;;  %v1390_v50 = vpop.xlane.xlu0 %1389  ;;  %v1487_v10 = vmul.f32 %v2695_v4, %v3671_v40 }
 0x3f7   : > { %2706 = vrcp.f32 %v1390_v50  ;;  %v1438_v45 = vpop.xlane.xlu1 %1437  ;;  %v1501_v56 = vmul.f32 %v2697_v14, %v3676_v47 }
 0x3f8   : > { %2401 = vmatprep.mubr.msk.f32.mxu0 %vm1156_vm3, %v1487_v10  ;;  %2708 = vrcp.f32 %v1438_v45 }
 0x3f9   : > { %v2699_v36 = vpop.eup %2698  ;;  %2422 = vmatprep.mubr.msk.f32.mxu1 %vm1156_vm3, %v1501_v56 }
 0x3fa   : > { %2423 = vmatmul.mubr.msk.f32.gmra.mrb[42].mxu1 %vm1156_vm3, %v1502_v25  ;;  %v1488_v18 = vmul.f32 %v2699_v36, %v3680_v62  ;;  %v2701_v1 = vpop.eup %2700 }
 0x3fb   : > { %v1435_v63 = vpop.xlane.xlu1 %1434  ;;  %v1504_v22 = vmul.f32 %v2701_v1, %v3685_v59 }
 0x3fc   : > { %2710 = vrcp.f32 %v1435_v63  ;;  %2402 = vmatmul.mubr.msk.f32.gmra.mrb[44].mxu0 %vm1156_vm3, %v1488_v18 }
 0x3fd   : > { %v2703_v40 = vpop.eup %2702 }
 0x3fe   : > { %v2705_v42 = vpop.eup %2704  ;;  %v1489_v47 = vmul.f32 %v2703_v40, %v3691_v0 }
 0x3ff   : > { %v1441_v8 = vpop.xlane.xlu1 %1440  ;;  %v1503_v31 = vmul.f32 %v2705_v42, %v3694_v60 }
 0x400   : > { %2712 = vrcp.f32 %v1441_v8  ;;  %2404 = vmatprep.mubr.msk.f32.mxu0 %vm1156_vm3, %v1489_v47 }
 0x401   : > { %v2707_v44 = vpop.eup %2706  ;;  %2425 = vmatprep.mubr.msk.f32.mxu1 %vm1156_vm3, %v1503_v31 }
 0x402   : > { %2426 = vmatmul.mubr.msk.f32.gmra.mrb[44].mxu1 %vm1156_vm3, %v1504_v22  ;;  %v1490_v62 = vmul.f32 %v2707_v44, %v3700_v6  ;;  %v2709_v0 = vpop.eup %2708 }
 0x403   : > { %v1444_v7 = vpop.xlane.xlu1 %1443  ;;  %v1506_v17 = vmul.f32 %v2709_v0, %v3703_v29 }
 0x404   : > { %2714 = vrcp.f32 %v1444_v7  ;;  %2405 = vmatmul.mubr.msk.f32.gmra.mrb[46].mxu0 %vm1156_vm3, %v1490_v62 }
 0x406   : > { %v2711_v53 = vpop.eup %2710 }
 0x407   : > { %v1505_v60 = vmul.f32 %v2711_v53, %v3709_v15 }
 0x409   : > { %2428 = vmatprep.mubr.msk.f32.mxu1 %vm1156_vm3, %v1505_v60 }
 0x40a   : > { %v2713_v59 = vpop.eup %2712  ;;  %2429 = vmatmul.mubr.msk.f32.gmra.mrb[46].mxu1 %vm1156_vm3, %v1506_v17 }
 0x40b   : > { %v1507_v49 = vmul.f32 %v2713_v59, %v3713_v24 }
 0x40d   : > { %2431 = vmatprep.mubr.msk.f32.mxu1 %vm1156_vm3, %v1507_v49 }
 0x40e   : > { %v2715_v6 = vpop.eup %2714 }
 0x40f   : > { %v1508_v41 = vmul.f32 %v2715_v6, %v3717_v23 }
 0x411   : > { %2432 = vmatmul.mubr.msk.f32.gmra.mrb[48].mxu1 %vm1156_vm3, %v1508_v41 }
 0x48c   : > { %v2388_v20 = vpop.f32.mrb[34].mxu0 }
 0x48d   : > { %1832 = vst [vmem:[%s3787_s22 + $0x8] sm:$0xff] %v2388_v20  ;;  %v1672_v29 = vpop.f32.mrb[35].mxu0 }
 0x48e   : > { %1831 = vst [vmem:[%s3787_s22] sm:$0xff] %v1672_v29 }
 0x494   : > { %v2391_v15 = vpop.f32.mrb[36].mxu0 }
 0x495   : > { %1834 = vst [vmem:[%s3787_s22 + $0x18] sm:$0xff] %v2391_v15  ;;  %v1682_v24 = vpop.f32.mrb[37].mxu0 }
 0x496   : > { %1833 = vst [vmem:[%s3787_s22 + $0x10] sm:$0xff] %v1682_v24 }
 0x4b0   : > { %v2394_v23 = vpop.f32.mrb[38].mxu0 }
 0x4b1   : > { %1836 = vst [vmem:[%s3787_s22 + $0x28] sm:$0xff] %v2394_v23  ;;  %v1692_v21 = vpop.f32.mrb[39].mxu0 }
 0x4b2   : > { %1835 = vst [vmem:[%s3787_s22 + $0x20] sm:$0xff] %v1692_v21 }
 0x4b4   : > { %v2409_v26 = vpop.f32.mrb[32].mxu1 }
 0x4b5   : > { %1846 = vst [vmem:[%s3787_s22 + $0x78] sm:$0xff] %v2409_v26  ;;  %v1742_v30 = vpop.f32.mrb[33].mxu1 }
 0x4b6   : > { %1845 = vst [vmem:[%s3787_s22 + $0x70] sm:$0xff] %v1742_v30 }
 0x4b8   : > { %v2412_v34 = vpop.f32.mrb[34].mxu1 }
 0x4b9   : > { %1848 = vst [vmem:[%s3787_s22 + $0x88] sm:$0xff] %v2412_v34  ;;  %v1752_v52 = vpop.f32.mrb[35].mxu1 }
 0x4ba   : > { %1847 = vst [vmem:[%s3787_s22 + $0x80] sm:$0xff] %v1752_v52 }
 0x4bc   : > { %v2415_v32 = vpop.f32.mrb[36].mxu1 }
 0x4bd   : > { %1850 = vst [vmem:[%s3787_s22 + $0x98] sm:$0xff] %v2415_v32  ;;  %v1762_v58 = vpop.f32.mrb[37].mxu1 }
 0x4be   : > { %1849 = vst [vmem:[%s3787_s22 + $0x90] sm:$0xff] %v1762_v58 }
 0x4bf   : > { %v2397_v19 = vpop.f32.mrb[40].mxu0 }
 0x4c0   : > { %1838 = vst [vmem:[%s3787_s22 + $0x38] sm:$0xff] %v2397_v19  ;;  %v1702_v16 = vpop.f32.mrb[41].mxu0  ;;  %v2418_v46 = vpop.f32.mrb[38].mxu1 }
 0x4c1   : > { %1837 = vst [vmem:[%s3787_s22 + $0x30] sm:$0xff] %v1702_v16  ;;  %1852 = vst [vmem:[%s3787_s22 + $0xa8] sm:$0xff] %v2418_v46  ;;  %v1772_v33 = vpop.f32.mrb[39].mxu1 }
 0x4c2   : > { %1851 = vst [vmem:[%s3787_s22 + $0xa0] sm:$0xff] %v1772_v33 }
 0x4c5   : > { %v2421_v57 = vpop.f32.mrb[40].mxu1 }
 0x4c6   : > { %1854 = vst [vmem:[%s3787_s22 + $0xb8] sm:$0xff] %v2421_v57  ;;  %v1782_v37 = vpop.f32.mrb[41].mxu1 }
 0x4c7   : > { %1853 = vst [vmem:[%s3787_s22 + $0xb0] sm:$0xff] %v1782_v37  ;;  %v2400_v39 = vpop.f32.mrb[42].mxu0 }
 0x4c8   : > { %1840 = vst [vmem:[%s3787_s22 + $0x48] sm:$0xff] %v2400_v39  ;;  %v1712_v38 = vpop.f32.mrb[43].mxu0 }
 0x4c9   : > { %1839 = vst [vmem:[%s3787_s22 + $0x40] sm:$0xff] %v1712_v38 }
 0x4cd   : > { %v2424_v43 = vpop.f32.mrb[42].mxu1 }
 0x4ce   : > { %1856 = vst [vmem:[%s3787_s22 + $0xc8] sm:$0xff] %v2424_v43  ;;  %v1792_v55 = vpop.f32.mrb[43].mxu1 }
 0x4cf   : > { %1855 = vst [vmem:[%s3787_s22 + $0xc0] sm:$0xff] %v1792_v55  ;;  %v2403_v2 = vpop.f32.mrb[44].mxu0 }
 0x4d0   : > { %1842 = vst [vmem:[%s3787_s22 + $0x58] sm:$0xff] %v2403_v2  ;;  %v1722_v27 = vpop.f32.mrb[45].mxu0 }
 0x4d1   : > { %1841 = vst [vmem:[%s3787_s22 + $0x50] sm:$0xff] %v1722_v27 }
 0x4d5   : > { %v2427_v28 = vpop.f32.mrb[44].mxu1 }
 0x4d6   : > { %1858 = vst [vmem:[%s3787_s22 + $0xd8] sm:$0xff] %v2427_v28  ;;  %v1802_v61 = vpop.f32.mrb[45].mxu1 }
 0x4d7   : > { %1857 = vst [vmem:[%s3787_s22 + $0xd0] sm:$0xff] %v1802_v61  ;;  %v2406_v13 = vpop.f32.mrb[46].mxu0 }
 0x4d8   : > { %1844 = vst [vmem:[%s3787_s22 + $0x68] sm:$0xff] %v2406_v13  ;;  %v1732_v48 = vpop.f32.mrb[47].mxu0 }
 0x4d9   : > { %1843 = vst [vmem:[%s3787_s22 + $0x60] sm:$0xff] %v1732_v48 }
 0x4dd   : > { %v2430_v54 = vpop.f32.mrb[46].mxu1 }
 0x4de   : > { %1860 = vst [vmem:[%s3787_s22 + $0xe8] sm:$0xff] %v2430_v54  ;;  %v1812_v9 = vpop.f32.mrb[47].mxu1 }
 0x4df   : > { %1859 = vst [vmem:[%s3787_s22 + $0xe0] sm:$0xff] %v1812_v9 }
 0x4e4   : > { %v2433_v3 = vpop.f32.mrb[48].mxu1 }
 0x4e5   : > { %1862 = vst [vmem:[%s3787_s22 + $0xf8] sm:$0xff] %v2433_v3  ;;  %v1822_v51 = vpop.f32.mrb[49].mxu1 }
 0x4e6   : > { %1861 = vst [vmem:[%s3787_s22 + $0xf0] sm:$0xff] %v1822_v51 }
 0x4e7   : > { %2845 = shalt.err (!%p2842_p13)
}
 0x4e8   : > { %s2846_s19 = scalar_lea.hbm %s3824_s21, 4096  ;;  %s2850_s24 = scalar_lea.hbm %s3885_s8, 8192 }
 0x4e9   : > { %p2847_p8 = scmp.ne.s32.totalorder %s3824_s21, %s2846_s19  ;;  %p2851_p11 = scmp.lt.u32.totalorder %s3824_s21, %s3885_s8 }
 0x4ea   : > { %p2852_p0 = scmp.lt.u32.totalorder %s2850_s24, %s2846_s19  ;;  %p2854_p6 = scmp.lt.u32.totalorder %s2846_s19, %s3824_s21 }
 0x4eb   : > { %p2848_p12 = pnand %p2847_p8, %p3923_p10 }
 0x4ec   : > { %p2853_p2 = por %p2852_p0, %p2851_p11 }
 0x4ed   : > { %p2849_p1 = pneg %p2848_p12 }
 0x4ee   : > { %p2855_p3 = por %p2854_p6, %p2853_p2 }
 0x4f0   : > { %p2856_p4 = pnand %p2855_p3, %p2849_p1 }
 0x4f2   : > { %2859 = shalt.err (!%p2856_p4)
}
 0x4f3   : > { %s2939_s18 = smov 128   ;;  %s2940_s17 = smov 8  }
 0x4f4   : > { %2504 = dma.vmem_to_hbm [thread:$0]  (%p3923_p10), %s3826_s26, 4096, %s3824_s21, %s1864_s12, %s2939_s18, %s2939_s18, %s2940_s17  }
 0x4f5 PF: > { %s3924_s14 = sld [smem:[#allocation17_spill]]  ;;  %s3925_s22 = sld [smem:[#allocation19_spill]] }
 0x4f6   : > { %p3927_p5 = scmp.ge.s32.totalorder %s2926_s10, 2 }
 0x4fb   : > { %s1894_s20 = sand.u32 1, %s3924_s14   ;;  %p3926_p9 = scmp.ne.s32.totalorder %s3925_s22, 0 }
 0x4fc   : > { %s1895_s6 = scalar_lea.sflag [#allocation5], %s1894_s20 }
 0x4fd   : > { %p2521_p7 = pnand %p3927_p5, %p3926_p9 }
 0x4ff   : > { %2901 = dma.done.wait (!%p2521_p7), %s1895_s6, 4096  }
 0x500   : > { %2903 = vsyncadd (!%p2521_p7), %s1895_s6, 4294963200  ;;  %s28_s10 = sadd.s32 1, %s2926_s10   ;;  %s3928_s15 = sld [smem:[#allocation18_spill]] }
 0x501   : > { %p25_p13 = scmp.ge.s32.totalorder %s28_s10, 4   ;;  %s3929_s29 = sld [smem:[#allocation21_spill]] }
 0x502   : > { %s3930_s23 = sld [smem:[#allocation20_spill]]  ;;  %s3931_s27 = smov %s2910_s28 }
 0x503   : > { %s3933_s30 = smov %s2922_s9  ;;  %27 = sbr.rel (!%p25_p13) target bundleno = 13 (0xd), region = 128 }
 0x506   : > { %s3932_s28 = smov %s3928_s15 }
 0x508   : > { %s3934_s9 = smov %s3930_s23 }
 0x50a   :  { %1900 = vsyncpa [#allocation4], 1 }
 0x50b   :  { %1902 = vsyncpa [#allocation4 + $0x1], 1 }
 0x50c   :  { %1903 = vsyncpa [#allocation7], 1 }
 0x50d   :  { %1905 = vsyncpa [#allocation7 + $0x1], 1 }
 0x50e   :  { %1906 = vsyncpa [#allocation10], 1 }
 0x50f   :  { %1907 = vsyncpa [#allocation5], 1 }
 0x510   :  { %1909 = vsyncpa [#allocation5 + $0x1], 1 }

</bundles_post_ra>
